<compile_context>
chip_gen: v7x
topology: tpu7x:2x2x1
jax: 0.10.0
libtpu: 0.0.40
codegen_flags: <defaults>
</compile_context>

<pallas_src>
import jax
import jax.numpy as jnp
from jax import lax
from jax.experimental import pallas as pl
from jax.experimental.pallas import tpu as pltpu


def _round_up(v, m):
    return ((v + m - 1) // m) * m


# -----------------------------------------------------------------------------
# Pallas kernel
# -----------------------------------------------------------------------------
def make_en_attention_kernel(N, E_real, Ep, tE, INF, ONF, HF, H, D):
    HD = H * D
    HF2 = HF // 2
    # per-edge stash layout: s | edge_feat | rel_pos | x_col | xn_row | xn_col
    S_LO, S_HI = 0, H
    EF_LO, EF_HI = H, H + HF
    RP_LO, RP_HI = H + HF, H + HF + 3
    XC_LO, XC_HI = RP_HI, RP_HI + 3
    XNR_LO, XNR_HI = XC_HI, XC_HI + 3
    XNC_LO, XNC_HI = XNR_HI, XNR_HI + 3
    PACK = XNC_HI

    scale = 1.0 / (D ** 0.5)
    inv_nm1 = 1.0 / max(N - 1, 1)
    f32 = jnp.float32
    NEG = -1e9          # masked-logit value (matches the torch reference)
    VERY_NEG = -1e30    # identity for the running per-node max

    def kernel(row_ref, col_ref, mask_ref, h_ref, x_ref,
               wqkv, bqkv, wo, bo,
               pw1, pb1, wpe, bpe,
               ew1, eb1, ew2, eb2,
               mw1, mb1, mw2, mb2,
               wgcx, bgcx, wcx2, bcx2, coordw,
               out_ref,
               prep_ref, m_ref, l_ref, acc_ref, pack_ref):

        phase = pl.program_id(0)
        t = pl.program_id(1)
        n_tiles = pl.num_programs(1)
        e_start = pl.multiple_of(t * tE, 8)

        def lin(z, w, b):
            return jnp.dot(z, w[...], preferred_element_type=f32) + b[...]

        def silu(z):
            return z * jax.nn.sigmoid(z)

        # gather / scatter expressed as matmuls against in-kernel one-hots
        def gather(one_hot, node_mat):            # [tE,N] @ [N,F]   -> [tE,F]
            return jnp.dot(one_hot, node_mat, preferred_element_type=f32)

        def gather_t(one_hot, acc_hn):            # [tE,N] . [Hh,N]^T -> [tE,Hh]
            return lax.dot_general(one_hot, acc_hn, (((1,), (1,)), ((), ())),
                                   preferred_element_type=f32)

        def scatter_nf(one_hot, edge_mat):        # [tE,N]^T . [tE,F] -> [N,F]
            return lax.dot_general(one_hot, edge_mat, (((0,), (0,)), ((), ())),
                                   preferred_element_type=f32)

        def scatter_hn(edge_mat, one_hot):        # [tE,Hh]^T . [tE,N] -> [Hh,N]
            return lax.dot_general(edge_mat, one_hot, (((0,), (0,)), ((), ())),
                                   preferred_element_type=f32)

        # one-hot row matrix built in-kernel (a few VPU compare vregs);
        # nothing of size [E, N] ever comes from HBM.
        lane_n = lax.broadcasted_iota(jnp.int32, (tE, N), 1)
        g_row = (lane_n == row_ref[...]).astype(f32)              # [tE, N]
        eidx = lax.broadcasted_iota(jnp.int32, (tE, 1), 0) + t * tE
        valid = (eidx < E_real).astype(f32)                       # [tE, 1]

        # ---------------------------------------------------------------
        # phase 0: node prep (once) + per-edge logits/features + node max
        # ---------------------------------------------------------------
        @pl.when(jnp.logical_and(phase == 0, t == 0))
        def _init():
            qkv = lin(h_ref[...], wqkv, bqkv)                     # [N, 3HD]
            x = x_ref[...]
            x_mean = jnp.mean(x, axis=0, keepdims=True)
            xc = x - x_mean
            x_std = jnp.sqrt(jnp.sum(xc * xc, axis=0, keepdims=True) * inv_nm1)
            prep_ref[:, 0:3 * HD] = qkv
            prep_ref[:, 3 * HD:3 * HD + 3] = xc / (x_std + 1e-8)
            m_ref[...] = jnp.full((H, N), VERY_NEG, f32)
            l_ref[...] = jnp.zeros((H, N), f32)
            acc_ref[...] = jnp.zeros((N, HD + 3), f32)

        @pl.when(phase == 0)
        def _phase0():
            g_col = (lane_n == col_ref[...]).astype(f32)
            mask = mask_ref[...]                                  # [tE, 1]
            h = h_ref[...]
            x = x_ref[...]
            xn = prep_ref[:, 3 * HD:3 * HD + 3]
            q_n = prep_ref[:, 0:HD]
            k_n = prep_ref[:, HD:2 * HD]

            # packed gathers: wide fields first, 3-lane geometry last
            row_src = jnp.concatenate([h, q_n, x, xn], axis=-1)   # [N, INF+HD+6]
            col_src = jnp.concatenate([h, k_n, x, xn], axis=-1)
            row_pack = gather(g_row, row_src)                     # [tE, INF+HD+6]
            col_pack = gather(g_col, col_src)
            h_row = row_pack[:, 0:INF]
            q_row = row_pack[:, INF:INF + HD]
            x_row = row_pack[:, INF + HD:INF + HD + 3]
            xn_row = row_pack[:, INF + HD + 3:INF + HD + 6]
            h_col = col_pack[:, 0:INF]
            k_col = col_pack[:, INF:INF + HD]
            x_col = col_pack[:, INF + HD:INF + HD + 3]
            xn_col = col_pack[:, INF + HD + 3:INF + HD + 6]

            rel_pos = x_row - x_col
            rel_dist = jnp.sum(rel_pos * rel_pos, axis=-1, keepdims=True)

            # pos_mlp first layer is a K=1 contraction: do it on the VPU
            p1 = silu(rel_dist * pw1[...] + pb1[...])             # [tE, HF2]
            edge_attr = jnp.concatenate([h_row, h_col, rel_dist, xn_row, xn_col],
                                        axis=-1)                  # [tE, 2INF+7]
            edge_feat = lin(silu(lin(edge_attr, ew1, eb1)), ew2, eb2)   # [tE, HF]
            # fused pos_mlp[2] + edge_weight (one matmul over the concat)
            pe = lin(jnp.concatenate([p1, edge_feat], axis=-1), wpe, bpe)  # [tE, H]

            # per-head q.k via lane reductions (no head-pooling matmul)
            qk = q_row * k_col
            s = jnp.concatenate(
                [jnp.sum(qk[:, hh * D:(hh + 1) * D], axis=-1, keepdims=True)
                 for hh in range(H)], axis=-1) * scale + pe       # [tE, H]
            s = jnp.where(mask > 0.0, s, NEG)

            # stash what phases 1 / 2 need
            pack = jnp.concatenate([s, edge_feat, rel_pos, x_col, xn_row, xn_col],
                                   axis=-1)                       # [tE, PACK]
            pack_ref[pl.ds(e_start, tE), :] = pack

            # running per-node max (per head), accumulator layout [H, N]
            tile_m = jnp.concatenate(
                [jnp.max(jnp.where(g_row > 0.0, s[:, hh:hh + 1], VERY_NEG),
                         axis=0, keepdims=True) for hh in range(H)], axis=0)
            m_ref[...] = jnp.maximum(m_ref[...], tile_m)

        # ---------------------------------------------------------------
        # phase 1: per-node softmax denominator
        # ---------------------------------------------------------------
        @pl.when(phase == 1)
        def _phase1():
            s = pack_ref[pl.ds(e_start, tE), S_LO:S_HI]           # [tE, H]
            m_row = gather_t(g_row, m_ref[...])                   # [tE, H]
            e_s = jnp.exp(s - m_row) * valid
            l_ref[...] += scatter_hn(e_s, g_row)                  # [H, N]

        # ---------------------------------------------------------------
        # phase 2: attention, messages, coord update, scatter, finalize
        # ---------------------------------------------------------------
        @pl.when(phase == 2)
        def _phase2():
            g_col = (lane_n == col_ref[...]).astype(f32)
            pack = pack_ref[pl.ds(e_start, tE), :]
            s = pack[:, S_LO:S_HI]
            edge_feat = pack[:, EF_LO:EF_HI]
            rel_pos = pack[:, RP_LO:RP_HI]
            x_col = pack[:, XC_LO:XC_HI]
            xn_row = pack[:, XNR_LO:XNR_HI]
            xn_col = pack[:, XNC_LO:XNC_HI]

            m_row = gather_t(g_row, m_ref[...])                   # [tE, H]
            l_row = gather_t(g_row, l_ref[...])                   # [tE, H]
            attn = (jnp.exp(s - m_row) / (l_row + 1e-8)) * valid  # exact division

            attn_mean = jnp.mean(attn, axis=1, keepdims=True)
            msg_in = jnp.concatenate([edge_feat, attn_mean, rel_pos, xn_row, xn_col],
                                     axis=-1)                     # [tE, HF+10]
            messages = lin(silu(lin(msg_in, mw1, mb1)), mw2, mb2)  # [tE, HF]

            # fused gate / coord[1] / cross[1] + block-diag coord[2]|cross[2]
            gcx = lin(messages, wgcx, bgcx)                       # [tE, H+2HF]
            gates = jax.nn.sigmoid(gcx[:, 0:H])
            cx = silu(gcx[:, H:H + 2 * HF])
            cw_xw = lin(cx, wcx2, bcx2)                           # [tE, 2H]
            coord_w = cw_xw[:, 0:H]
            cross_g = cw_xw[:, H:2 * H]

            head_w = jnp.sum(gates * coord_w * coordw[...], axis=1, keepdims=True)
            weighted_pos = head_w * (0.9 * rel_pos + 0.1 * x_col)

            # roll(1, axis=0) over the *global* edge list: in-tile XLU roll,
            # row 0 replaced by the previous (real) edge's rel_pos from the stash
            prev_idx = jnp.where(t == 0, E_real - 1, e_start - 1)
            prev_rel = pack_ref[pl.ds(prev_idx, 1), RP_LO:RP_HI]  # [1, 3]
            rolled = pltpu.roll(rel_pos, shift=1, axis=0)
            first = lax.broadcasted_iota(jnp.int32, (tE, 1), 0) == 0
            rolled = jnp.where(first, prev_rel, rolled)

            a0, a1, a2 = rel_pos[:, 0:1], rel_pos[:, 1:2], rel_pos[:, 2:3]
            b0, b1, b2 = rolled[:, 0:1], rolled[:, 1:2], rolled[:, 2:3]
            cross_vec = jnp.concatenate([a1 * b2 - a2 * b1,
                                         a2 * b0 - a0 * b2,
                                         a0 * b1 - a1 * b0], axis=-1)
            coord_msg = weighted_pos + jnp.sum(cross_g, axis=1, keepdims=True) * cross_vec

            # gather v for this tile, per-head lane replication (no K=4 matmul)
            v_col = gather(g_col, prep_ref[:, 2 * HD:3 * HD])     # [tE, HD]
            wv = jnp.concatenate(
                [attn[:, hh:hh + 1] * v_col[:, hh * D:(hh + 1) * D]
                 for hh in range(H)], axis=-1)                    # [tE, HD]

            payload = jnp.concatenate([wv, coord_msg], axis=-1) * valid
            acc_ref[...] += scatter_nf(g_row, payload)            # [N, HD+3]

            @pl.when(t == n_tiles - 1)
            def _finalize():
                feats = lin(acc_ref[:, 0:HD], wo, bo)             # [N, ONF]
                coords = acc_ref[:, HD:HD + 3] * inv_nm1          # [N, 3]
                out_ref[...] = jnp.concatenate([feats, coords], axis=-1)

    return kernel, PACK


# -----------------------------------------------------------------------------
# Wrapper: fused weights, edge padding, BlockSpecs / grid, pallas_call
# -----------------------------------------------------------------------------
def en_attention_pallas(h, x, edge_index, params, cfg, mask=None, edge_tile=None):
    N, INF = h.shape
    E = int(edge_index.shape[1])
    H, D = cfg["n_heads"], cfg["dim_head"]
    HF, ONF = cfg["hidden_nf"], cfg["output_nf"]
    HD = H * D

    (wq, bq, wk, bk, wv, bv, wo, bo,
     pw1, pb1, pw2, pb2,
     ew1, eb1, ew2, eb2, eww, ewb,
     mw1, mb1, mw2, mb2,
     gw, gb, cw1, cb1, cw2, cb2, coordw,
     xw1, xb1, xw2, xb2) = params

    # fused / block-diagonal weights (fewer, wider MXU passes)
    wqkv = jnp.concatenate([wq, wk, wv], axis=1)           # [INF, 3HD]
    bqkv = jnp.concatenate([bq, bk, bv], axis=1)
    wpe = jnp.concatenate([pw2, eww], axis=0)              # [HF//2 + HF, H]
    bpe = pb2 + ewb
    wgcx = jnp.concatenate([gw, cw1, xw1], axis=1)         # [HF, H + 2HF]
    bgcx = jnp.concatenate([gb, cb1, xb1], axis=1)
    zero = jnp.zeros((HF, H), jnp.float32)
    wcx2 = jnp.concatenate([jnp.concatenate([cw2, zero], axis=1),
                            jnp.concatenate([zero, xw2], axis=1)], axis=0)
    bcx2 = jnp.concatenate([cb2, xb2], axis=1)             # [1, 2H]

    if edge_tile is None:
        edge_tile = min(512, _round_up(E, 8))
    tE = _round_up(edge_tile, 8)
    Ep = _round_up(E, tE)
    nT = Ep // tE
    pad = Ep - E

    row = edge_index[0].astype(jnp.int32)
    col = edge_index[1].astype(jnp.int32)
    row_p = jnp.pad(row, (0, pad)).reshape(Ep, 1)
    col_p = jnp.pad(col, (0, pad)).reshape(Ep, 1)
    mask_e = (jnp.ones((E,), jnp.float32) if mask is None
              else mask.astype(jnp.float32).reshape(E))
    mask_p = jnp.pad(mask_e, (0, pad)).reshape(Ep, 1)      # padded edges masked

    kernel, PACK = make_en_attention_kernel(N, E, Ep, tE, INF, ONF, HF, H, D)

    def full2d(a):
        return pl.BlockSpec(a.shape, lambda p, t: (0, 0))

    etile = pl.BlockSpec((tE, 1), lambda p, t: (t, 0))

    node_and_weights = [h.astype(jnp.float32), x.astype(jnp.float32),
                        wqkv, bqkv, wo, bo, pw1, pb1, wpe, bpe,
                        ew1, eb1, ew2, eb2, mw1, mb1, mw2, mb2,
                        wgcx, bgcx, wcx2, bcx2, coordw]
    args = [row_p, col_p, mask_p] + node_and_weights
    in_specs = [etile, etile, etile] + [full2d(a) for a in node_and_weights]

    scratch = [
        pltpu.VMEM((N, 3 * HD + 3), jnp.float32),   # q|k|v and x_norm node prep
        pltpu.VMEM((H, N), jnp.float32),            # per-node, per-head max
        pltpu.VMEM((H, N), jnp.float32),            # per-node, per-head sum
        pltpu.VMEM((N, HD + 3), jnp.float32),       # weighted values | coord acc
        pltpu.VMEM((Ep, PACK), jnp.float32),        # per-edge stash
    ]

    out_w = ONF + 3
    out_shape = jax.ShapeDtypeStruct((N, out_w), jnp.float32)
    out_spec = pl.BlockSpec((N, out_w), lambda p, t: (0, 0))

    # VMEM budget: derived from the actual resident footprint, never the whole
    # 64 MiB of a v7x TensorCore.
    weight_elems = sum(int(a.size) for a in node_and_weights)
    scratch_elems = (N * (3 * HD + 3) + 2 * H * N + N * (HD + 3) + Ep * PACK)
    work_elems = tE * (2 * N + 2 * (INF + HD + 6) + 6 * HF + 2 * HD + 64)
    est_bytes = 4 * (weight_elems + scratch_elems + work_elems
                     + 3 * tE * 2 + N * out_w)
    vmem_limit = int(min(48 * 2 ** 20, max(32 * 2 ** 20, 2 * est_bytes)))

    fused = pl.pallas_call(
        kernel,
        grid=(3, nT),
        in_specs=in_specs,
        out_specs=out_spec,
        out_shape=out_shape,
        scratch_shapes=scratch,
        compiler_params=pltpu.CompilerParams(
            dimension_semantics=("arbitrary", "arbitrary"),
            vmem_limit_bytes=vmem_limit),
    )(*args)

    return fused[:, 0:ONF], fused[:, ONF:ONF + 3]


# -----------------------------------------------------------------------------
# Deterministic parameter init (shapes from EnAttention.__init__)
# -----------------------------------------------------------------------------
def init_params(key, cfg):
    INF, ONF = cfg["input_nf"], cfg["output_nf"]
    HF, H, D = cfg["hidden_nf"], cfg["n_heads"], cfg["dim_head"]
    HD = H * D
    EIN = 2 * INF + 1 + 6
    MIN_ = HF + 1 + 3 + 6

    shapes = [
        (INF, HD), (1, HD),                       # to_q
        (INF, HD), (1, HD),                       # to_k
        (INF, HD), (1, HD),                       # to_v
        (HD, ONF), (1, ONF),                      # to_out
        (1, HF // 2), (1, HF // 2), (HF // 2, H), (1, H),   # pos_mlp
        (EIN, HF), (1, HF), (HF, HF), (1, HF),    # edge_mlp
        (HF, H), (1, H),                          # edge_weight
        (MIN_, HF), (1, HF), (HF, HF), (1, HF),   # msg_mlp
        (HF, H), (1, H),                          # gate_mlp
        (HF, HF), (1, HF), (HF, H), (1, H),       # coord_mlp
        (1, H),                                   # coord_weights (ones)
        (HF, HF), (1, HF), (HF, H), (1, H),       # cross_mlp
    ]
    ones_idx = {28}
    keys = jax.random.split(key, len(shapes))
    params = []
    for i, (shp, k) in enumerate(zip(shapes, keys)):
        if i in ones_idx:
            params.append(jnp.ones(shp, jnp.float32))
        else:
            params.append(0.1 * jax.random.normal(k, shp, jnp.float32))
    return params


# -----------------------------------------------------------------------------
# Pure-JAX reference (for verification)
# -----------------------------------------------------------------------------
def en_attention_ref(h, x, edge_index, params, cfg, mask=None):
    (wq, bq, wk, bk, wv, bv, wo, bo,
     pw1, pb1, pw2, pb2,
     ew1, eb1, ew2, eb2, eww, ewb,
     mw1, mb1, mw2, mb2,
     gw, gb, cw1, cb1, cw2, cb2, coordw,
     xw1, xb1, xw2, xb2) = params
    H, D = cfg["n_heads"], cfg["dim_head"]
    N = h.shape[0]
    row, col = edge_index[0], edge_index[1]
    silu = jax.nn.silu

    q = (h @ wq + bq).reshape(N, H, D)
    k = (h @ wk + bk).reshape(N, H, D)
    v = (h @ wv + bv).reshape(N, H, D)
    rel_pos = x[row] - x[col]
    rel_dist = jnp.sum(rel_pos ** 2, axis=-1, keepdims=True)
    pos_enc = silu(rel_dist @ pw1 + pb1) @ pw2 + pb2
    x_norm = (x - x.mean(axis=0, keepdims=True)) / (
        jnp.std(x, axis=0, keepdims=True, ddof=1) + 1e-8)
    edge_attr = jnp.concatenate(
        [h[row], h[col], rel_dist, x_norm[row], x_norm[col]], axis=-1)
    edge_feat = silu(edge_attr @ ew1 + eb1) @ ew2 + eb2
    edge_w = edge_feat @ eww + ewb
    attn = jnp.sum(q[row] * k[col], axis=-1) / (D ** 0.5) + pos_enc + edge_w
    if mask is not None:
        attn = jnp.where(mask.reshape(-1, 1) > 0, attn, -1e9)
    amax = jax.ops.segment_max(attn, row, num_segments=N)
    attn = jnp.exp(attn - amax[row])
    asum = jax.ops.segment_sum(attn, row, num_segments=N)
    attn = attn / (asum[row] + 1e-8)
    msg_in = jnp.concatenate(
        [edge_feat, attn.mean(axis=1, keepdims=True), rel_pos,
         x_norm[row], x_norm[col]], axis=-1)
    messages = silu(msg_in @ mw1 + mb1) @ mw2 + mb2
    gates = jax.nn.sigmoid(messages @ gw + gb)
    cwgt = silu(messages @ cw1 + cb1) @ cw2 + cb2
    head_w = jnp.sum(gates * cwgt * coordw, axis=1, keepdims=True)
    weighted_pos = head_w * (0.9 * rel_pos + 0.1 * x[col])
    coord_update = jax.ops.segment_sum(weighted_pos, row, num_segments=N) / (N - 1)
    cross_vec = jnp.cross(rel_pos, jnp.roll(rel_pos, 1, axis=0))
    cross_gates = silu(messages @ xw1 + xb1) @ xw2 + xb2
    cross_update = jax.ops.segment_sum(
        jnp.sum(cross_gates, axis=1, keepdims=True) * cross_vec,
        row, num_segments=N) / (N - 1)
    coord_out = coord_update + cross_update
    wv_h = attn[:, :, None] * v[col]
    weighted_values = jax.ops.segment_sum(wv_h, row, num_segments=N).reshape(N, -1)
    out_feat = weighted_values @ wo + bo
    return out_feat, coord_out


# -----------------------------------------------------------------------------
if __name__ == "__main__":
    cfg = dict(input_nf=8, output_nf=8, hidden_nf=16, n_heads=4, dim_head=8)
    N, E = 8, 16

    key = jax.random.PRNGKey(0)
    k_h, k_x, k_row, k_col, k_par = jax.random.split(key, 5)
    h = jax.random.normal(k_h, (N, cfg["input_nf"]), jnp.float32)
    x = jax.random.normal(k_x, (N, 3), jnp.float32)
    row = jax.random.randint(k_row, (E,), 0, N)
    col = jax.random.randint(k_col, (E,), 0, N)
    edge_index = jnp.stack([row, col], axis=0)
    params = init_params(k_par, cfg)

    # edge_tile=8 -> 2 edge tiles, exercises the multi-tile / 3-phase grid.
    out_feat, coord_update = en_attention_pallas(
        h, x, edge_index, params, cfg, edge_tile=8)
    jax.block_until_ready((out_feat, coord_update))

    with jax.default_matmul_precision("highest"):
        ref_feat, ref_coord = en_attention_ref(h, x, edge_index, params, cfg)

    assert out_feat.shape == (N, cfg["output_nf"])
    assert coord_update.shape == (N, 3)
    # Kernel math is all-f32 now (no bf16 casts / approx reciprocal); the
    # tolerance only covers the TPU matmul-pass default precision.
    err_f = float(jnp.max(jnp.abs(out_feat - ref_feat)))
    err_c = float(jnp.max(jnp.abs(coord_update - ref_coord)))
    assert jnp.allclose(out_feat, ref_feat, atol=2e-2, rtol=2e-2), err_f
    assert jnp.allclose(coord_update, ref_coord, atol=2e-2, rtol=2e-2), err_c

    print("KERNEL_OK")
</pallas_src>

<mosaic_0001>
module attributes {stable_mosaic.version = 11 : i64} {
  func.func @kernel(%arg0: i32, %arg1: i32, %arg2: memref<8x1xi32, #tpu.memory_space<vmem>>, %arg3: memref<8x1xi32, #tpu.memory_space<vmem>>, %arg4: memref<8x1xf32, #tpu.memory_space<vmem>>, %arg5: memref<8x8xf32, #tpu.memory_space<vmem>>, %arg6: memref<8x3xf32, #tpu.memory_space<vmem>>, %arg7: memref<8x96xf32, #tpu.memory_space<vmem>>, %arg8: memref<1x96xf32, #tpu.memory_space<vmem>>, %arg9: memref<32x8xf32, #tpu.memory_space<vmem>>, %arg10: memref<1x8xf32, #tpu.memory_space<vmem>>, %arg11: memref<1x8xf32, #tpu.memory_space<vmem>>, %arg12: memref<1x8xf32, #tpu.memory_space<vmem>>, %arg13: memref<24x4xf32, #tpu.memory_space<vmem>>, %arg14: memref<1x4xf32, #tpu.memory_space<vmem>>, %arg15: memref<23x16xf32, #tpu.memory_space<vmem>>, %arg16: memref<1x16xf32, #tpu.memory_space<vmem>>, %arg17: memref<16x16xf32, #tpu.memory_space<vmem>>, %arg18: memref<1x16xf32, #tpu.memory_space<vmem>>, %arg19: memref<26x16xf32, #tpu.memory_space<vmem>>, %arg20: memref<1x16xf32, #tpu.memory_space<vmem>>, %arg21: memref<16x16xf32, #tpu.memory_space<vmem>>, %arg22: memref<1x16xf32, #tpu.memory_space<vmem>>, %arg23: memref<16x36xf32, #tpu.memory_space<vmem>>, %arg24: memref<1x36xf32, #tpu.memory_space<vmem>>, %arg25: memref<32x8xf32, #tpu.memory_space<vmem>>, %arg26: memref<1x8xf32, #tpu.memory_space<vmem>>, %arg27: memref<1x4xf32, #tpu.memory_space<vmem>>, %arg28: memref<8x11xf32, #tpu.memory_space<vmem>>, %arg29: memref<8x99xf32, #tpu.memory_space<vmem>>, %arg30: memref<4x8xf32, #tpu.memory_space<vmem>>, %arg31: memref<4x8xf32, #tpu.memory_space<vmem>>, %arg32: memref<8x35xf32, #tpu.memory_space<vmem>>, %arg33: memref<16x32xf32, #tpu.memory_space<vmem>>) attributes {dimension_semantics = [#tpu.dimension_semantics<arbitrary>, #tpu.dimension_semantics<arbitrary>], iteration_bounds = array<i64: 3, 2>, scalar_prefetch = 0 : i64, scratch_operands = 5 : i64, tpu.core_type = #tpu.core_type<tc>, window_params = [{transform_indices = @transform_0, window_bounds = array<i64: 8, 1>}, {transform_indices = @transform_1, window_bounds = array<i64: 8, 1>}, {transform_indices = @transform_2, window_bounds = array<i64: 8, 1>}, {pipeline_mode = #tpu.pipeline_mode<synchronous>, transform_indices = @transform_3, window_bounds = array<i64: 8, 8>}, {pipeline_mode = #tpu.pipeline_mode<synchronous>, transform_indices = @transform_4, window_bounds = array<i64: 8, 3>}, {pipeline_mode = #tpu.pipeline_mode<synchronous>, transform_indices = @transform_5, window_bounds = array<i64: 8, 96>}, {pipeline_mode = #tpu.pipeline_mode<synchronous>, transform_indices = @transform_6, window_bounds = array<i64: 1, 96>}, {pipeline_mode = #tpu.pipeline_mode<synchronous>, transform_indices = @transform_7, window_bounds = array<i64: 32, 8>}, {pipeline_mode = #tpu.pipeline_mode<synchronous>, transform_indices = @transform_8, window_bounds = array<i64: 1, 8>}, {pipeline_mode = #tpu.pipeline_mode<synchronous>, transform_indices = @transform_9, window_bounds = array<i64: 1, 8>}, {pipeline_mode = #tpu.pipeline_mode<synchronous>, transform_indices = @transform_10, window_bounds = array<i64: 1, 8>}, {pipeline_mode = #tpu.pipeline_mode<synchronous>, transform_indices = @transform_11, window_bounds = array<i64: 24, 4>}, {pipeline_mode = #tpu.pipeline_mode<synchronous>, transform_indices = @transform_12, window_bounds = array<i64: 1, 4>}, {pipeline_mode = #tpu.pipeline_mode<synchronous>, transform_indices = @transform_13, window_bounds = array<i64: 23, 16>}, {pipeline_mode = #tpu.pipeline_mode<synchronous>, transform_indices = @transform_14, window_bounds = array<i64: 1, 16>}, {pipeline_mode = #tpu.pipeline_mode<synchronous>, transform_indices = @transform_15, window_bounds = array<i64: 16, 16>}, {pipeline_mode = #tpu.pipeline_mode<synchronous>, transform_indices = @transform_16, window_bounds = array<i64: 1, 16>}, {pipeline_mode = #tpu.pipeline_mode<synchronous>, transform_indices = @transform_17, window_bounds = array<i64: 26, 16>}, {pipeline_mode = #tpu.pipeline_mode<synchronous>, transform_indices = @transform_18, window_bounds = array<i64: 1, 16>}, {pipeline_mode = #tpu.pipeline_mode<synchronous>, transform_indices = @transform_19, window_bounds = array<i64: 16, 16>}, {pipeline_mode = #tpu.pipeline_mode<synchronous>, transform_indices = @transform_20, window_bounds = array<i64: 1, 16>}, {pipeline_mode = #tpu.pipeline_mode<synchronous>, transform_indices = @transform_21, window_bounds = array<i64: 16, 36>}, {pipeline_mode = #tpu.pipeline_mode<synchronous>, transform_indices = @transform_22, window_bounds = array<i64: 1, 36>}, {pipeline_mode = #tpu.pipeline_mode<synchronous>, transform_indices = @transform_23, window_bounds = array<i64: 32, 8>}, {pipeline_mode = #tpu.pipeline_mode<synchronous>, transform_indices = @transform_24, window_bounds = array<i64: 1, 8>}, {pipeline_mode = #tpu.pipeline_mode<synchronous>, transform_indices = @transform_25, window_bounds = array<i64: 1, 4>}, {pipeline_mode = #tpu.pipeline_mode<synchronous>, transform_indices = @transform_26, window_bounds = array<i64: 8, 11>}]} {
    %c8_i32 = arith.constant 8 : i32
    %0 = arith.muli %arg1, %c8_i32 : i32
    %1 = tpu.assume_multiple %0, 8 : i32
    %2 = tpu.iota {dimensions = array<i32: 1>} : vector<8x8xi32>
    %c0 = arith.constant 0 : index
    %c0_0 = arith.constant 0 : index
    %3 = vector.load %arg2[%c0, %c0_0] : memref<8x1xi32, #tpu.memory_space<vmem>>, vector<8x1xi32>
    %4 = vector.broadcast %3 : vector<8x1xi32> to vector<8x8xi32>
    %5 = arith.cmpi eq, %2, %4 : vector<8x8xi32>
    %6 = arith.extui %5 : vector<8x8xi1> to vector<8x8xi32>
    %7 = arith.sitofp %6 : vector<8x8xi32> to vector<8x8xf32>
    %8 = tpu.iota {dimensions = array<i32: 0>} : vector<8x1xi32>
    %c8_i32_1 = arith.constant 8 : i32
    %9 = arith.muli %arg1, %c8_i32_1 : i32
    %10 = vector.broadcast %9 : i32 to vector<8x1xi32>
    %11 = arith.addi %8, %10 : vector<8x1xi32>
    %c16_i32 = arith.constant 16 : i32
    %12 = vector.broadcast %c16_i32 : i32 to vector<8x1xi32>
    %13 = arith.cmpi slt, %11, %12 : vector<8x1xi32>
    %14 = arith.extui %13 : vector<8x1xi1> to vector<8x1xi32>
    %15 = arith.sitofp %14 : vector<8x1xi32> to vector<8x1xf32>
    %c0_i32 = arith.constant 0 : i32
    %16 = arith.cmpi eq, %arg0, %c0_i32 : i32
    %c0_i32_2 = arith.constant 0 : i32
    %17 = arith.cmpi eq, %arg1, %c0_i32_2 : i32
    %18 = arith.andi %16, %17 : i1
    %19 = arith.extui %18 : i1 to i32
    %c0_i32_3 = arith.constant 0 : i32
    %20 = arith.cmpi ne, %19, %c0_i32_3 : i32
    scf.if %20 {
      %c0_8 = arith.constant 0 : index
      %c0_9 = arith.constant 0 : index
      %30 = vector.load %arg5[%c0_8, %c0_9] : memref<8x8xf32, #tpu.memory_space<vmem>>, vector<8x8xf32>
      %c0_10 = arith.constant 0 : index
      %c0_11 = arith.constant 0 : index
      %31 = vector.load %arg7[%c0_10, %c0_11] : memref<8x96xf32, #tpu.memory_space<vmem>>, vector<8x96xf32>
      %cst = arith.constant dense<0.000000e+00> : vector<8x96xf32>
      %32 = tpu.matmul %30, %31, %cst {dimension_numbers = #tpu.dot_dimension_numbers<[1], [0], [0], [1], [0, 0, 1, 1], [], []>} : vector<8x8xf32>, vector<8x96xf32>, vector<8x96xf32> -> vector<8x96xf32>
      %c0_12 = arith.constant 0 : index
      %c0_13 = arith.constant 0 : index
      %33 = vector.load %arg8[%c0_12, %c0_13] : memref<1x96xf32, #tpu.memory_space<vmem>>, vector<1x96xf32>
      %34 = vector.broadcast %33 : vector<1x96xf32> to vector<8x96xf32>
      %35 = arith.addf %32, %34 : vector<8x96xf32>
      %c0_14 = arith.constant 0 : index
      %c0_15 = arith.constant 0 : index
      %36 = vector.load %arg6[%c0_14, %c0_15] : memref<8x3xf32, #tpu.memory_space<vmem>>, vector<8x3xf32>
      %cst_16 = arith.constant dense<0.000000e+00> : vector<3xf32>
      %37 = vector.multi_reduction <add>, %36, %cst_16 [0] : vector<8x3xf32> to vector<3xf32>
      %38 = vector.shape_cast %37 : vector<3xf32> to vector<1x3xf32>
      %cst_17 = arith.constant 8.000000e+00 : f32
      %39 = vector.broadcast %cst_17 : f32 to vector<1x3xf32>
      %40 = arith.divf %38, %39 : vector<1x3xf32>
      %41 = vector.broadcast %40 : vector<1x3xf32> to vector<8x3xf32>
      %42 = arith.subf %36, %41 : vector<8x3xf32>
      %43 = arith.mulf %42, %42 : vector<8x3xf32>
      %cst_18 = arith.constant dense<0.000000e+00> : vector<3xf32>
      %44 = vector.multi_reduction <add>, %43, %cst_18 [0] : vector<8x3xf32> to vector<3xf32>
      %45 = vector.shape_cast %44 : vector<3xf32> to vector<1x3xf32>
      %cst_19 = arith.constant 0.142857149 : f32
      %46 = vector.broadcast %cst_19 : f32 to vector<1x3xf32>
      %47 = arith.mulf %45, %46 : vector<1x3xf32>
      %48 = math.sqrt %47 : vector<1x3xf32>
      %c0_20 = arith.constant 0 : index
      %c0_21 = arith.constant 0 : index
      %49 = vector.load %arg29[%c0_20, %c0_21] : memref<8x99xf32, #tpu.memory_space<vmem>>, vector<8x96xf32>
      tpu.vector_store %arg29[%c0_20, %c0_21], %35 {strides = array<i32>} : memref<8x99xf32, #tpu.memory_space<vmem>>, vector<8x96xf32>,
      %cst_22 = arith.constant 9.99999993E-9 : f32
      %50 = vector.broadcast %cst_22 : f32 to vector<1x3xf32>
      %51 = arith.addf %48, %50 : vector<1x3xf32>
      %52 = vector.broadcast %51 : vector<1x3xf32> to vector<8x3xf32>
      %53 = arith.divf %42, %52 : vector<8x3xf32>
      %c0_23 = arith.constant 0 : index
      %c96 = arith.constant 96 : index
      %54 = vector.load %arg29[%c0_23, %c96] : memref<8x99xf32, #tpu.memory_space<vmem>>, vector<8x3xf32>
      tpu.vector_store %arg29[%c0_23, %c96], %53 {strides = array<i32>} : memref<8x99xf32, #tpu.memory_space<vmem>>, vector<8x3xf32>,
      %cst_24 = arith.constant -1.000000e+30 : f32
      %55 = vector.broadcast %cst_24 : f32 to vector<4x8xf32>
      %c0_25 = arith.constant 0 : index
      %c0_26 = arith.constant 0 : index
      %56 = vector.load %arg30[%c0_25, %c0_26] : memref<4x8xf32, #tpu.memory_space<vmem>>, vector<4x8xf32>
      tpu.vector_store %arg30[%c0_25, %c0_26], %55 {strides = array<i32>} : memref<4x8xf32, #tpu.memory_space<vmem>>, vector<4x8xf32>,
      %cst_27 = arith.constant 0.000000e+00 : f32
      %57 = vector.broadcast %cst_27 : f32 to vector<4x8xf32>
      %c0_28 = arith.constant 0 : index
      %c0_29 = arith.constant 0 : index
      %58 = vector.load %arg31[%c0_28, %c0_29] : memref<4x8xf32, #tpu.memory_space<vmem>>, vector<4x8xf32>
      tpu.vector_store %arg31[%c0_28, %c0_29], %57 {strides = array<i32>} : memref<4x8xf32, #tpu.memory_space<vmem>>, vector<4x8xf32>,
      %cst_30 = arith.constant 0.000000e+00 : f32
      %59 = vector.broadcast %cst_30 : f32 to vector<8x35xf32>
      %c0_31 = arith.constant 0 : index
      %c0_32 = arith.constant 0 : index
      %60 = vector.load %arg32[%c0_31, %c0_32] : memref<8x35xf32, #tpu.memory_space<vmem>>, vector<8x35xf32>
      tpu.vector_store %arg32[%c0_31, %c0_32], %59 {strides = array<i32>} : memref<8x35xf32, #tpu.memory_space<vmem>>, vector<8x35xf32>,
    } else {
    }
    %c0_i32_4 = arith.constant 0 : i32
    %21 = arith.cmpi eq, %arg0, %c0_i32_4 : i32
    %22 = arith.extui %21 : i1 to i32
    %c0_i32_5 = arith.constant 0 : i32
    %23 = arith.cmpi ne, %22, %c0_i32_5 : i32
    scf.if %23 {
      %c0_8 = arith.constant 0 : index
      %c0_9 = arith.constant 0 : index
      %30 = vector.load %arg3[%c0_8, %c0_9] : memref<8x1xi32, #tpu.memory_space<vmem>>, vector<8x1xi32>
      %31 = vector.broadcast %30 : vector<8x1xi32> to vector<8x8xi32>
      %32 = arith.cmpi eq, %2, %31 : vector<8x8xi32>
      %33 = arith.extui %32 : vector<8x8xi1> to vector<8x8xi32>
      %34 = arith.sitofp %33 : vector<8x8xi32> to vector<8x8xf32>
      %c0_10 = arith.constant 0 : index
      %c0_11 = arith.constant 0 : index
      %35 = vector.load %arg4[%c0_10, %c0_11] : memref<8x1xf32, #tpu.memory_space<vmem>>, vector<8x1xf32>
      %c0_12 = arith.constant 0 : index
      %c0_13 = arith.constant 0 : index
      %36 = vector.load %arg5[%c0_12, %c0_13] : memref<8x8xf32, #tpu.memory_space<vmem>>, vector<8x8xf32>
      %c0_14 = arith.constant 0 : index
      %c0_15 = arith.constant 0 : index
      %37 = vector.load %arg6[%c0_14, %c0_15] : memref<8x3xf32, #tpu.memory_space<vmem>>, vector<8x3xf32>
      %c0_16 = arith.constant 0 : index
      %c96 = arith.constant 96 : index
      %38 = vector.load %arg29[%c0_16, %c96] : memref<8x99xf32, #tpu.memory_space<vmem>>, vector<8x3xf32>
      %c0_17 = arith.constant 0 : index
      %c0_18 = arith.constant 0 : index
      %39 = vector.load %arg29[%c0_17, %c0_18] : memref<8x99xf32, #tpu.memory_space<vmem>>, vector<8x32xf32>
      %c0_19 = arith.constant 0 : index
      %c32 = arith.constant 32 : index
      %40 = vector.load %arg29[%c0_19, %c32] : memref<8x99xf32, #tpu.memory_space<vmem>>, vector<8x32xf32>
      %41 = tpu.concatenate %36, %39, %37, %38 in 1 : vector<8x8xf32>, vector<8x32xf32>, vector<8x3xf32>, vector<8x3xf32> -> vector<8x46xf32>
      %42 = tpu.concatenate %36, %40, %37, %38 in 1 : vector<8x8xf32>, vector<8x32xf32>, vector<8x3xf32>, vector<8x3xf32> -> vector<8x46xf32>
      %cst = arith.constant dense<0.000000e+00> : vector<8x46xf32>
      %43 = tpu.matmul %7, %41, %cst {dimension_numbers = #tpu.dot_dimension_numbers<[1], [0], [0], [1], [0, 0, 1, 1], [], []>} : vector<8x8xf32>, vector<8x46xf32>, vector<8x46xf32> -> vector<8x46xf32>
      %cst_20 = arith.constant dense<0.000000e+00> : vector<8x46xf32>
      %44 = tpu.matmul %34, %42, %cst_20 {dimension_numbers = #tpu.dot_dimension_numbers<[1], [0], [0], [1], [0, 0, 1, 1], [], []>} : vector<8x8xf32>, vector<8x46xf32>, vector<8x46xf32> -> vector<8x46xf32>
      %45 = vector.extract_strided_slice %43 {offsets = [0, 0], sizes = [8, 8], strides = [1, 1]} : vector<8x46xf32> to vector<8x8xf32>
      %46 = vector.extract_strided_slice %43 {offsets = [0, 8], sizes = [8, 32], strides = [1, 1]} : vector<8x46xf32> to vector<8x32xf32>
      %47 = vector.extract_strided_slice %43 {offsets = [0, 40], sizes = [8, 3], strides = [1, 1]} : vector<8x46xf32> to vector<8x3xf32>
      %48 = vector.extract_strided_slice %43 {offsets = [0, 43], sizes = [8, 3], strides = [1, 1]} : vector<8x46xf32> to vector<8x3xf32>
      %49 = vector.extract_strided_slice %44 {offsets = [0, 0], sizes = [8, 8], strides = [1, 1]} : vector<8x46xf32> to vector<8x8xf32>
      %50 = vector.extract_strided_slice %44 {offsets = [0, 8], sizes = [8, 32], strides = [1, 1]} : vector<8x46xf32> to vector<8x32xf32>
      %51 = vector.extract_strided_slice %44 {offsets = [0, 40], sizes = [8, 3], strides = [1, 1]} : vector<8x46xf32> to vector<8x3xf32>
      %52 = vector.extract_strided_slice %44 {offsets = [0, 43], sizes = [8, 3], strides = [1, 1]} : vector<8x46xf32> to vector<8x3xf32>
      %53 = arith.subf %47, %51 : vector<8x3xf32>
      %54 = arith.mulf %53, %53 : vector<8x3xf32>
      %cst_21 = arith.constant dense<0.000000e+00> : vector<8xf32>
      %55 = vector.multi_reduction <add>, %54, %cst_21 [1] : vector<8x3xf32> to vector<8xf32>
      %56 = vector.shape_cast %55 : vector<8xf32> to vector<8x1xf32>
      %c0_22 = arith.constant 0 : index
      %c0_23 = arith.constant 0 : index
      %57 = vector.load %arg11[%c0_22, %c0_23] : memref<1x8xf32, #tpu.memory_space<vmem>>, vector<1x8xf32>
      %58 = vector.broadcast %56 : vector<8x1xf32> to vector<8x8xf32>
      %59 = vector.broadcast %57 : vector<1x8xf32> to vector<8x8xf32>
      %60 = arith.mulf %58, %59 : vector<8x8xf32>
      %c0_24 = arith.constant 0 : index
      %c0_25 = arith.constant 0 : index
      %61 = vector.load %arg12[%c0_24, %c0_25] : memref<1x8xf32, #tpu.memory_space<vmem>>, vector<1x8xf32>
      %62 = vector.broadcast %61 : vector<1x8xf32> to vector<8x8xf32>
      %63 = arith.addf %60, %62 : vector<8x8xf32>
      %64 = arith.negf %63 : vector<8x8xf32>
      %65 = math.exp %64 : vector<8x8xf32>
      %cst_26 = arith.constant 1.000000e+00 : f32
      %66 = vector.broadcast %cst_26 : f32 to vector<8x8xf32>
      %67 = arith.addf %66, %65 : vector<8x8xf32>
      %68 = arith.divf %66, %67 : vector<8x8xf32>
      %69 = arith.mulf %63, %68 : vector<8x8xf32>
      %70 = tpu.concatenate %45, %49, %56, %48, %52 in 1 : vector<8x8xf32>, vector<8x8xf32>, vector<8x1xf32>, vector<8x3xf32>, vector<8x3xf32> -> vector<8x23xf32>
      %c0_27 = arith.constant 0 : index
      %c0_28 = arith.constant 0 : index
      %71 = vector.load %arg15[%c0_27, %c0_28] : memref<23x16xf32, #tpu.memory_space<vmem>>, vector<23x16xf32>
      %cst_29 = arith.constant dense<0.000000e+00> : vector<8x16xf32>
      %72 = tpu.matmul %70, %71, %cst_29 {dimension_numbers = #tpu.dot_dimension_numbers<[1], [0], [0], [1], [0, 0, 1, 1], [], []>} : vector<8x23xf32>, vector<23x16xf32>, vector<8x16xf32> -> vector<8x16xf32>
      %c0_30 = arith.constant 0 : index
      %c0_31 = arith.constant 0 : index
      %73 = vector.load %arg16[%c0_30, %c0_31] : memref<1x16xf32, #tpu.memory_space<vmem>>, vector<1x16xf32>
      %74 = vector.broadcast %73 : vector<1x16xf32> to vector<8x16xf32>
      %75 = arith.addf %72, %74 : vector<8x16xf32>
      %76 = arith.negf %75 : vector<8x16xf32>
      %77 = math.exp %76 : vector<8x16xf32>
      %cst_32 = arith.constant 1.000000e+00 : f32
      %78 = vector.broadcast %cst_32 : f32 to vector<8x16xf32>
      %79 = arith.addf %78, %77 : vector<8x16xf32>
      %80 = arith.divf %78, %79 : vector<8x16xf32>
      %81 = arith.mulf %75, %80 : vector<8x16xf32>
      %c0_33 = arith.constant 0 : index
      %c0_34 = arith.constant 0 : index
      %82 = vector.load %arg17[%c0_33, %c0_34] : memref<16x16xf32, #tpu.memory_space<vmem>>, vector<16x16xf32>
      %cst_35 = arith.constant dense<0.000000e+00> : vector<8x16xf32>
      %83 = tpu.matmul %81, %82, %cst_35 {dimension_numbers = #tpu.dot_dimension_numbers<[1], [0], [0], [1], [0, 0, 1, 1], [], []>} : vector<8x16xf32>, vector<16x16xf32>, vector<8x16xf32> -> vector<8x16xf32>
      %c0_36 = arith.constant 0 : index
      %c0_37 = arith.constant 0 : index
      %84 = vector.load %arg18[%c0_36, %c0_37] : memref<1x16xf32, #tpu.memory_space<vmem>>, vector<1x16xf32>
      %85 = vector.broadcast %84 : vector<1x16xf32> to vector<8x16xf32>
      %86 = arith.addf %83, %85 : vector<8x16xf32>
      %87 = tpu.concatenate %69, %86 in 1 : vector<8x8xf32>, vector<8x16xf32> -> vector<8x24xf32>
      %c0_38 = arith.constant 0 : index
      %c0_39 = arith.constant 0 : index
      %88 = vector.load %arg13[%c0_38, %c0_39] : memref<24x4xf32, #tpu.memory_space<vmem>>, vector<24x4xf32>
      %cst_40 = arith.constant dense<0.000000e+00> : vector<8x4xf32>
      %89 = tpu.matmul %87, %88, %cst_40 {dimension_numbers = #tpu.dot_dimension_numbers<[1], [0], [0], [1], [0, 0, 1, 1], [], []>} : vector<8x24xf32>, vector<24x4xf32>, vector<8x4xf32> -> vector<8x4xf32>
      %c0_41 = arith.constant 0 : index
      %c0_42 = arith.constant 0 : index
      %90 = vector.load %arg14[%c0_41, %c0_42] : memref<1x4xf32, #tpu.memory_space<vmem>>, vector<1x4xf32>
      %91 = vector.broadcast %90 : vector<1x4xf32> to vector<8x4xf32>
      %92 = arith.addf %89, %91 : vector<8x4xf32>
      %93 = arith.mulf %46, %50 : vector<8x32xf32>
      %94 = vector.extract_strided_slice %93 {offsets = [0, 0], sizes = [8, 8], strides = [1, 1]} : vector<8x32xf32> to vector<8x8xf32>
      %cst_43 = arith.constant dense<0.000000e+00> : vector<8xf32>
      %95 = vector.multi_reduction <add>, %94, %cst_43 [1] : vector<8x8xf32> to vector<8xf32>
      %96 = vector.shape_cast %95 : vector<8xf32> to vector<8x1xf32>
      %97 = vector.extract_strided_slice %93 {offsets = [0, 8], sizes = [8, 8], strides = [1, 1]} : vector<8x32xf32> to vector<8x8xf32>
      %cst_44 = arith.constant dense<0.000000e+00> : vector<8xf32>
      %98 = vector.multi_reduction <add>, %97, %cst_44 [1] : vector<8x8xf32> to vector<8xf32>
      %99 = vector.shape_cast %98 : vector<8xf32> to vector<8x1xf32>
      %100 = vector.extract_strided_slice %93 {offsets = [0, 16], sizes = [8, 8], strides = [1, 1]} : vector<8x32xf32> to vector<8x8xf32>
      %cst_45 = arith.constant dense<0.000000e+00> : vector<8xf32>
      %101 = vector.multi_reduction <add>, %100, %cst_45 [1] : vector<8x8xf32> to vector<8xf32>
      %102 = vector.shape_cast %101 : vector<8xf32> to vector<8x1xf32>
      %103 = vector.extract_strided_slice %93 {offsets = [0, 24], sizes = [8, 8], strides = [1, 1]} : vector<8x32xf32> to vector<8x8xf32>
      %cst_46 = arith.constant dense<0.000000e+00> : vector<8xf32>
      %104 = vector.multi_reduction <add>, %103, %cst_46 [1] : vector<8x8xf32> to vector<8xf32>
      %105 = vector.shape_cast %104 : vector<8xf32> to vector<8x1xf32>
      %106 = tpu.concatenate %96, %99, %102, %105 in 1 : vector<8x1xf32>, vector<8x1xf32>, vector<8x1xf32>, vector<8x1xf32> -> vector<8x4xf32>
      %cst_47 = arith.constant 0.353553385 : f32
      %107 = vector.broadcast %cst_47 : f32 to vector<8x4xf32>
      %108 = arith.mulf %106, %107 : vector<8x4xf32>
      %109 = arith.addf %108, %92 : vector<8x4xf32>
      %cst_48 = arith.constant 0.000000e+00 : f32
      %110 = vector.broadcast %cst_48 : f32 to vector<8x1xf32>
      %111 = arith.cmpf ogt, %35, %110 : vector<8x1xf32>
      %cst_49 = arith.constant -1.000000e+09 : f32
      %112 = vector.shape_cast %111 : vector<8x1xi1> to vector<8x1xi1>
      %113 = vector.broadcast %112 : vector<8x1xi1> to vector<8x4xi1>
      %114 = vector.broadcast %cst_49 : f32 to vector<8x4xf32>
      %115 = arith.select %113, %109, %114 : vector<8x4xi1>, vector<8x4xf32>
      %116 = tpu.concatenate %115, %86, %53, %51, %48, %52 in 1 : vector<8x4xf32>, vector<8x16xf32>, vector<8x3xf32>, vector<8x3xf32>, vector<8x3xf32>, vector<8x3xf32> -> vector<8x32xf32>
      %117 = arith.index_cast %1 : i32 to index
      %c0_50 = arith.constant 0 : index
      %118 = vector.load %arg33[%117, %c0_50] : memref<16x32xf32, #tpu.memory_space<vmem>>, vector<8x32xf32>
      tpu.vector_store %arg33[%117, %c0_50], %116 {strides = array<i32>} : memref<16x32xf32, #tpu.memory_space<vmem>>, vector<8x32xf32>,
      %cst_51 = arith.constant 0.000000e+00 : f32
      %119 = vector.broadcast %cst_51 : f32 to vector<8x8xf32>
      %120 = arith.cmpf ogt, %7, %119 : vector<8x8xf32>
      %121 = vector.extract_strided_slice %115 {offsets = [0, 0], sizes = [8, 1], strides = [1, 1]} : vector<8x4xf32> to vector<8x1xf32>
      %cst_52 = arith.constant -1.000000e+30 : f32
      %122 = vector.shape_cast %121 : vector<8x1xf32> to vector<8x1xf32>
      %123 = vector.broadcast %122 : vector<8x1xf32> to vector<8x8xf32>
      %124 = vector.broadcast %cst_52 : f32 to vector<8x8xf32>
      %125 = arith.select %120, %123, %124 : vector<8x8xi1>, vector<8x8xf32>
      %cst_53 = arith.constant dense<0xFF800000> : vector<8xf32>
      %126 = vector.multi_reduction <maximumf>, %125, %cst_53 [0] : vector<8x8xf32> to vector<8xf32>
      %127 = vector.shape_cast %126 : vector<8xf32> to vector<1x8xf32>
      %cst_54 = arith.constant 0.000000e+00 : f32
      %128 = vector.broadcast %cst_54 : f32 to vector<8x8xf32>
      %129 = arith.cmpf ogt, %7, %128 : vector<8x8xf32>
      %130 = vector.extract_strided_slice %115 {offsets = [0, 1], sizes = [8, 1], strides = [1, 1]} : vector<8x4xf32> to vector<8x1xf32>
      %cst_55 = arith.constant -1.000000e+30 : f32
      %131 = vector.shape_cast %130 : vector<8x1xf32> to vector<8x1xf32>
      %132 = vector.broadcast %131 : vector<8x1xf32> to vector<8x8xf32>
      %133 = vector.broadcast %cst_55 : f32 to vector<8x8xf32>
      %134 = arith.select %129, %132, %133 : vector<8x8xi1>, vector<8x8xf32>
      %cst_56 = arith.constant dense<0xFF800000> : vector<8xf32>
      %135 = vector.multi_reduction <maximumf>, %134, %cst_56 [0] : vector<8x8xf32> to vector<8xf32>
      %136 = vector.shape_cast %135 : vector<8xf32> to vector<1x8xf32>
      %cst_57 = arith.constant 0.000000e+00 : f32
      %137 = vector.broadcast %cst_57 : f32 to vector<8x8xf32>
      %138 = arith.cmpf ogt, %7, %137 : vector<8x8xf32>
      %139 = vector.extract_strided_slice %115 {offsets = [0, 2], sizes = [8, 1], strides = [1, 1]} : vector<8x4xf32> to vector<8x1xf32>
      %cst_58 = arith.constant -1.000000e+30 : f32
      %140 = vector.shape_cast %139 : vector<8x1xf32> to vector<8x1xf32>
      %141 = vector.broadcast %140 : vector<8x1xf32> to vector<8x8xf32>
      %142 = vector.broadcast %cst_58 : f32 to vector<8x8xf32>
      %143 = arith.select %138, %141, %142 : vector<8x8xi1>, vector<8x8xf32>
      %cst_59 = arith.constant dense<0xFF800000> : vector<8xf32>
      %144 = vector.multi_reduction <maximumf>, %143, %cst_59 [0] : vector<8x8xf32> to vector<8xf32>
      %145 = vector.shape_cast %144 : vector<8xf32> to vector<1x8xf32>
      %cst_60 = arith.constant 0.000000e+00 : f32
      %146 = vector.broadcast %cst_60 : f32 to vector<8x8xf32>
      %147 = arith.cmpf ogt, %7, %146 : vector<8x8xf32>
      %148 = vector.extract_strided_slice %115 {offsets = [0, 3], sizes = [8, 1], strides = [1, 1]} : vector<8x4xf32> to vector<8x1xf32>
      %cst_61 = arith.constant -1.000000e+30 : f32
      %149 = vector.shape_cast %148 : vector<8x1xf32> to vector<8x1xf32>
      %150 = vector.broadcast %149 : vector<8x1xf32> to vector<8x8xf32>
      %151 = vector.broadcast %cst_61 : f32 to vector<8x8xf32>
      %152 = arith.select %147, %150, %151 : vector<8x8xi1>, vector<8x8xf32>
      %cst_62 = arith.constant dense<0xFF800000> : vector<8xf32>
      %153 = vector.multi_reduction <maximumf>, %152, %cst_62 [0] : vector<8x8xf32> to vector<8xf32>
      %154 = vector.shape_cast %153 : vector<8xf32> to vector<1x8xf32>
      %155 = tpu.concatenate %127, %136, %145, %154 in 0 : vector<1x8xf32>, vector<1x8xf32>, vector<1x8xf32>, vector<1x8xf32> -> vector<4x8xf32>
      %c0_63 = arith.constant 0 : index
      %c0_64 = arith.constant 0 : index
      %156 = vector.load %arg30[%c0_63, %c0_64] : memref<4x8xf32, #tpu.memory_space<vmem>>, vector<4x8xf32>
      %157 = arith.maximumf %156, %155 : vector<4x8xf32>
      %c0_65 = arith.constant 0 : index
      %c0_66 = arith.constant 0 : index
      %158 = vector.load %arg30[%c0_65, %c0_66] : memref<4x8xf32, #tpu.memory_space<vmem>>, vector<4x8xf32>
      tpu.vector_store %arg30[%c0_65, %c0_66], %157 {strides = array<i32>} : memref<4x8xf32, #tpu.memory_space<vmem>>, vector<4x8xf32>,
    } else {
    }
    %c1_i32 = arith.constant 1 : i32
    %24 = arith.cmpi eq, %arg0, %c1_i32 : i32
    %25 = arith.extui %24 : i1 to i32
    %c0_i32_6 = arith.constant 0 : i32
    %26 = arith.cmpi ne, %25, %c0_i32_6 : i32
    scf.if %26 {
      %30 = arith.index_cast %1 : i32 to index
      %c0_8 = arith.constant 0 : index
      %31 = vector.load %arg33[%30, %c0_8] : memref<16x32xf32, #tpu.memory_space<vmem>>, vector<8x4xf32>
      %c0_9 = arith.constant 0 : index
      %c0_10 = arith.constant 0 : index
      %32 = vector.load %arg30[%c0_9, %c0_10] : memref<4x8xf32, #tpu.memory_space<vmem>>, vector<4x8xf32>
      %cst = arith.constant dense<0.000000e+00> : vector<8x4xf32>
      %33 = tpu.matmul %7, %32, %cst {dimension_numbers = #tpu.dot_dimension_numbers<[1], [1], [0], [0], [0, 0, 1, 0], [], []>} : vector<8x8xf32>, vector<4x8xf32>, vector<8x4xf32> -> vector<8x4xf32>
      %34 = arith.subf %31, %33 : vector<8x4xf32>
      %35 = math.exp %34 : vector<8x4xf32>
      %36 = vector.broadcast %15 : vector<8x1xf32> to vector<8x4xf32>
      %37 = arith.mulf %35, %36 : vector<8x4xf32>
      %c0_11 = arith.constant 0 : index
      %c0_12 = arith.constant 0 : index
      %38 = vector.load %arg31[%c0_11, %c0_12] : memref<4x8xf32, #tpu.memory_space<vmem>>, vector<4x8xf32>
      %cst_13 = arith.constant dense<0.000000e+00> : vector<4x8xf32>
      %39 = tpu.matmul %37, %7, %cst_13 {dimension_numbers = #tpu.dot_dimension_numbers<[0], [0], [1], [1], [0, 1, 1, 1], [], []>} : vector<8x4xf32>, vector<8x8xf32>, vector<4x8xf32> -> vector<4x8xf32>
      %40 = arith.addf %38, %39 : vector<4x8xf32>
      %c0_14 = arith.constant 0 : index
      %c0_15 = arith.constant 0 : index
      %41 = vector.load %arg31[%c0_14, %c0_15] : memref<4x8xf32, #tpu.memory_space<vmem>>, vector<4x8xf32>
      tpu.vector_store %arg31[%c0_14, %c0_15], %40 {strides = array<i32>} : memref<4x8xf32, #tpu.memory_space<vmem>>, vector<4x8xf32>,
    } else {
    }
    %c2_i32 = arith.constant 2 : i32
    %27 = arith.cmpi eq, %arg0, %c2_i32 : i32
    %28 = arith.extui %27 : i1 to i32
    %c0_i32_7 = arith.constant 0 : i32
    %29 = arith.cmpi ne, %28, %c0_i32_7 : i32
    scf.if %29 {
      %c0_8 = arith.constant 0 : index
      %c0_9 = arith.constant 0 : index
      %30 = vector.load %arg3[%c0_8, %c0_9] : memref<8x1xi32, #tpu.memory_space<vmem>>, vector<8x1xi32>
      %31 = vector.broadcast %30 : vector<8x1xi32> to vector<8x8xi32>
      %32 = arith.cmpi eq, %2, %31 : vector<8x8xi32>
      %33 = arith.extui %32 : vector<8x8xi1> to vector<8x8xi32>
      %34 = arith.sitofp %33 : vector<8x8xi32> to vector<8x8xf32>
      %35 = arith.index_cast %1 : i32 to index
      %c0_10 = arith.constant 0 : index
      %36 = vector.load %arg33[%35, %c0_10] : memref<16x32xf32, #tpu.memory_space<vmem>>, vector<8x32xf32>
      %37 = vector.extract_strided_slice %36 {offsets = [0, 0], sizes = [8, 4], strides = [1, 1]} : vector<8x32xf32> to vector<8x4xf32>
      %38 = vector.extract_strided_slice %36 {offsets = [0, 4], sizes = [8, 16], strides = [1, 1]} : vector<8x32xf32> to vector<8x16xf32>
      %39 = vector.extract_strided_slice %36 {offsets = [0, 20], sizes = [8, 3], strides = [1, 1]} : vector<8x32xf32> to vector<8x3xf32>
      %40 = vector.extract_strided_slice %36 {offsets = [0, 23], sizes = [8, 3], strides = [1, 1]} : vector<8x32xf32> to vector<8x3xf32>
      %41 = vector.extract_strided_slice %36 {offsets = [0, 26], sizes = [8, 3], strides = [1, 1]} : vector<8x32xf32> to vector<8x3xf32>
      %42 = vector.extract_strided_slice %36 {offsets = [0, 29], sizes = [8, 3], strides = [1, 1]} : vector<8x32xf32> to vector<8x3xf32>
      %c0_11 = arith.constant 0 : index
      %c0_12 = arith.constant 0 : index
      %43 = vector.load %arg30[%c0_11, %c0_12] : memref<4x8xf32, #tpu.memory_space<vmem>>, vector<4x8xf32>
      %cst = arith.constant dense<0.000000e+00> : vector<8x4xf32>
      %44 = tpu.matmul %7, %43, %cst {dimension_numbers = #tpu.dot_dimension_numbers<[1], [1], [0], [0], [0, 0, 1, 0], [], []>} : vector<8x8xf32>, vector<4x8xf32>, vector<8x4xf32> -> vector<8x4xf32>
      %c0_13 = arith.constant 0 : index
      %c0_14 = arith.constant 0 : index
      %45 = vector.load %arg31[%c0_13, %c0_14] : memref<4x8xf32, #tpu.memory_space<vmem>>, vector<4x8xf32>
      %cst_15 = arith.constant dense<0.000000e+00> : vector<8x4xf32>
      %46 = tpu.matmul %7, %45, %cst_15 {dimension_numbers = #tpu.dot_dimension_numbers<[1], [1], [0], [0], [0, 0, 1, 0], [], []>} : vector<8x8xf32>, vector<4x8xf32>, vector<8x4xf32> -> vector<8x4xf32>
      %47 = arith.subf %37, %44 : vector<8x4xf32>
      %48 = math.exp %47 : vector<8x4xf32>
      %cst_16 = arith.constant 9.99999993E-9 : f32
      %49 = vector.broadcast %cst_16 : f32 to vector<8x4xf32>
      %50 = arith.addf %46, %49 : vector<8x4xf32>
      %51 = arith.divf %48, %50 : vector<8x4xf32>
      %52 = vector.broadcast %15 : vector<8x1xf32> to vector<8x4xf32>
      %53 = arith.mulf %51, %52 : vector<8x4xf32>
      %cst_17 = arith.constant dense<0.000000e+00> : vector<8xf32>
      %54 = vector.multi_reduction <add>, %53, %cst_17 [1] : vector<8x4xf32> to vector<8xf32>
      %55 = vector.shape_cast %54 : vector<8xf32> to vector<8x1xf32>
      %cst_18 = arith.constant 4.000000e+00 : f32
      %56 = vector.broadcast %cst_18 : f32 to vector<8x1xf32>
      %57 = arith.divf %55, %56 : vector<8x1xf32>
      %58 = tpu.concatenate %38, %57, %39, %41, %42 in 1 : vector<8x16xf32>, vector<8x1xf32>, vector<8x3xf32>, vector<8x3xf32>, vector<8x3xf32> -> vector<8x26xf32>
      %c0_19 = arith.constant 0 : index
      %c0_20 = arith.constant 0 : index
      %59 = vector.load %arg19[%c0_19, %c0_20] : memref<26x16xf32, #tpu.memory_space<vmem>>, vector<26x16xf32>
      %cst_21 = arith.constant dense<0.000000e+00> : vector<8x16xf32>
      %60 = tpu.matmul %58, %59, %cst_21 {dimension_numbers = #tpu.dot_dimension_numbers<[1], [0], [0], [1], [0, 0, 1, 1], [], []>} : vector<8x26xf32>, vector<26x16xf32>, vector<8x16xf32> -> vector<8x16xf32>
      %c0_22 = arith.constant 0 : index
      %c0_23 = arith.constant 0 : index
      %61 = vector.load %arg20[%c0_22, %c0_23] : memref<1x16xf32, #tpu.memory_space<vmem>>, vector<1x16xf32>
      %62 = vector.broadcast %61 : vector<1x16xf32> to vector<8x16xf32>
      %63 = arith.addf %60, %62 : vector<8x16xf32>
      %64 = arith.negf %63 : vector<8x16xf32>
      %65 = math.exp %64 : vector<8x16xf32>
      %cst_24 = arith.constant 1.000000e+00 : f32
      %66 = vector.broadcast %cst_24 : f32 to vector<8x16xf32>
      %67 = arith.addf %66, %65 : vector<8x16xf32>
      %68 = arith.divf %66, %67 : vector<8x16xf32>
      %69 = arith.mulf %63, %68 : vector<8x16xf32>
      %c0_25 = arith.constant 0 : index
      %c0_26 = arith.constant 0 : index
      %70 = vector.load %arg21[%c0_25, %c0_26] : memref<16x16xf32, #tpu.memory_space<vmem>>, vector<16x16xf32>
      %cst_27 = arith.constant dense<0.000000e+00> : vector<8x16xf32>
      %71 = tpu.matmul %69, %70, %cst_27 {dimension_numbers = #tpu.dot_dimension_numbers<[1], [0], [0], [1], [0, 0, 1, 1], [], []>} : vector<8x16xf32>, vector<16x16xf32>, vector<8x16xf32> -> vector<8x16xf32>
      %c0_28 = arith.constant 0 : index
      %c0_29 = arith.constant 0 : index
      %72 = vector.load %arg22[%c0_28, %c0_29] : memref<1x16xf32, #tpu.memory_space<vmem>>, vector<1x16xf32>
      %73 = vector.broadcast %72 : vector<1x16xf32> to vector<8x16xf32>
      %74 = arith.addf %71, %73 : vector<8x16xf32>
      %c0_30 = arith.constant 0 : index
      %c0_31 = arith.constant 0 : index
      %75 = vector.load %arg23[%c0_30, %c0_31] : memref<16x36xf32, #tpu.memory_space<vmem>>, vector<16x36xf32>
      %cst_32 = arith.constant dense<0.000000e+00> : vector<8x36xf32>
      %76 = tpu.matmul %74, %75, %cst_32 {dimension_numbers = #tpu.dot_dimension_numbers<[1], [0], [0], [1], [0, 0, 1, 1], [], []>} : vector<8x16xf32>, vector<16x36xf32>, vector<8x36xf32> -> vector<8x36xf32>
      %c0_33 = arith.constant 0 : index
      %c0_34 = arith.constant 0 : index
      %77 = vector.load %arg24[%c0_33, %c0_34] : memref<1x36xf32, #tpu.memory_space<vmem>>, vector<1x36xf32>
      %78 = vector.broadcast %77 : vector<1x36xf32> to vector<8x36xf32>
      %79 = arith.addf %76, %78 : vector<8x36xf32>
      %80 = vector.extract_strided_slice %79 {offsets = [0, 0], sizes = [8, 4], strides = [1, 1]} : vector<8x36xf32> to vector<8x4xf32>
      %81 = arith.negf %80 : vector<8x4xf32>
      %82 = math.exp %81 : vector<8x4xf32>
      %cst_35 = arith.constant 1.000000e+00 : f32
      %83 = vector.broadcast %cst_35 : f32 to vector<8x4xf32>
      %84 = arith.addf %83, %82 : vector<8x4xf32>
      %85 = arith.divf %83, %84 : vector<8x4xf32>
      %86 = vector.extract_strided_slice %79 {offsets = [0, 4], sizes = [8, 32], strides = [1, 1]} : vector<8x36xf32> to vector<8x32xf32>
      %87 = arith.negf %86 : vector<8x32xf32>
      %88 = math.exp %87 : vector<8x32xf32>
      %cst_36 = arith.constant 1.000000e+00 : f32
      %89 = vector.broadcast %cst_36 : f32 to vector<8x32xf32>
      %90 = arith.addf %89, %88 : vector<8x32xf32>
      %91 = arith.divf %89, %90 : vector<8x32xf32>
      %92 = arith.mulf %86, %91 : vector<8x32xf32>
      %c0_37 = arith.constant 0 : index
      %c0_38 = arith.constant 0 : index
      %93 = vector.load %arg25[%c0_37, %c0_38] : memref<32x8xf32, #tpu.memory_space<vmem>>, vector<32x8xf32>
      %cst_39 = arith.constant dense<0.000000e+00> : vector<8x8xf32>
      %94 = tpu.matmul %92, %93, %cst_39 {dimension_numbers = #tpu.dot_dimension_numbers<[1], [0], [0], [1], [0, 0, 1, 1], [], []>} : vector<8x32xf32>, vector<32x8xf32>, vector<8x8xf32> -> vector<8x8xf32>
      %c0_40 = arith.constant 0 : index
      %c0_41 = arith.constant 0 : index
      %95 = vector.load %arg26[%c0_40, %c0_41] : memref<1x8xf32, #tpu.memory_space<vmem>>, vector<1x8xf32>
      %96 = vector.broadcast %95 : vector<1x8xf32> to vector<8x8xf32>
      %97 = arith.addf %94, %96 : vector<8x8xf32>
      %98 = vector.extract_strided_slice %97 {offsets = [0, 0], sizes = [8, 4], strides = [1, 1]} : vector<8x8xf32> to vector<8x4xf32>
      %99 = vector.extract_strided_slice %97 {offsets = [0, 4], sizes = [8, 4], strides = [1, 1]} : vector<8x8xf32> to vector<8x4xf32>
      %100 = arith.mulf %85, %98 : vector<8x4xf32>
      %c0_42 = arith.constant 0 : index
      %c0_43 = arith.constant 0 : index
      %101 = vector.load %arg27[%c0_42, %c0_43] : memref<1x4xf32, #tpu.memory_space<vmem>>, vector<1x4xf32>
      %102 = vector.broadcast %101 : vector<1x4xf32> to vector<8x4xf32>
      %103 = arith.mulf %100, %102 : vector<8x4xf32>
      %cst_44 = arith.constant dense<0.000000e+00> : vector<8xf32>
      %104 = vector.multi_reduction <add>, %103, %cst_44 [1] : vector<8x4xf32> to vector<8xf32>
      %105 = vector.shape_cast %104 : vector<8xf32> to vector<8x1xf32>
      %cst_45 = arith.constant 0.899999976 : f32
      %106 = vector.broadcast %cst_45 : f32 to vector<8x3xf32>
      %107 = arith.mulf %106, %39 : vector<8x3xf32>
      %cst_46 = arith.constant 1.000000e-01 : f32
      %108 = vector.broadcast %cst_46 : f32 to vector<8x3xf32>
      %109 = arith.mulf %108, %40 : vector<8x3xf32>
      %110 = arith.addf %107, %109 : vector<8x3xf32>
      %111 = vector.broadcast %105 : vector<8x1xf32> to vector<8x3xf32>
      %112 = arith.mulf %111, %110 : vector<8x3xf32>
      %c0_i32_47 = arith.constant 0 : i32
      %113 = arith.cmpi eq, %arg1, %c0_i32_47 : i32
      %c1_i32_48 = arith.constant 1 : i32
      %114 = arith.subi %1, %c1_i32_48 : i32
      %c15_i32 = arith.constant 15 : i32
      %115 = arith.select %113, %c15_i32, %114 : i32
      %116 = arith.index_cast %115 : i32 to index
      %c20 = arith.constant 20 : index
      %117 = vector.load %arg33[%116, %c20] : memref<16x32xf32, #tpu.memory_space<vmem>>, vector<1x3xf32>
      %c1_i32_49 = arith.constant 1 : i32
      %118 = tpu.dynamic_rotate %39 by %c1_i32_49 dim 0 : vector<8x3xf32>, i32 -> vector<8x3xf32>
      %119 = tpu.iota {dimensions = array<i32: 0>} : vector<8x1xi32>
      %c0_i32_50 = arith.constant 0 : i32
      %120 = vector.broadcast %c0_i32_50 : i32 to vector<8x1xi32>
      %121 = arith.cmpi eq, %119, %120 : vector<8x1xi32>
      %122 = vector.shape_cast %121 : vector<8x1xi1> to vector<8x1xi1>
      %123 = vector.broadcast %122 : vector<8x1xi1> to vector<8x3xi1>
      %124 = vector.shape_cast %117 : vector<1x3xf32> to vector<1x3xf32>
      %125 = vector.broadcast %124 : vector<1x3xf32> to vector<8x3xf32>
      %126 = arith.select %123, %125, %118 : vector<8x3xi1>, vector<8x3xf32>
      %127 = vector.extract_strided_slice %39 {offsets = [0, 0], sizes = [8, 1], strides = [1, 1]} : vector<8x3xf32> to vector<8x1xf32>
      %128 = vector.extract_strided_slice %39 {offsets = [0, 1], sizes = [8, 1], strides = [1, 1]} : vector<8x3xf32> to vector<8x1xf32>
      %129 = vector.extract_strided_slice %39 {offsets = [0, 2], sizes = [8, 1], strides = [1, 1]} : vector<8x3xf32> to vector<8x1xf32>
      %130 = vector.extract_strided_slice %126 {offsets = [0, 0], sizes = [8, 1], strides = [1, 1]} : vector<8x3xf32> to vector<8x1xf32>
      %131 = vector.extract_strided_slice %126 {offsets = [0, 1], sizes = [8, 1], strides = [1, 1]} : vector<8x3xf32> to vector<8x1xf32>
      %132 = vector.extract_strided_slice %126 {offsets = [0, 2], sizes = [8, 1], strides = [1, 1]} : vector<8x3xf32> to vector<8x1xf32>
      %133 = arith.mulf %128, %132 : vector<8x1xf32>
      %134 = arith.mulf %129, %131 : vector<8x1xf32>
      %135 = arith.subf %133, %134 : vector<8x1xf32>
      %136 = arith.mulf %129, %130 : vector<8x1xf32>
      %137 = arith.mulf %127, %132 : vector<8x1xf32>
      %138 = arith.subf %136, %137 : vector<8x1xf32>
      %139 = arith.mulf %127, %131 : vector<8x1xf32>
      %140 = arith.mulf %128, %130 : vector<8x1xf32>
      %141 = arith.subf %139, %140 : vector<8x1xf32>
      %142 = tpu.concatenate %135, %138, %141 in 1 : vector<8x1xf32>, vector<8x1xf32>, vector<8x1xf32> -> vector<8x3xf32>
      %cst_51 = arith.constant dense<0.000000e+00> : vector<8xf32>
      %143 = vector.multi_reduction <add>, %99, %cst_51 [1] : vector<8x4xf32> to vector<8xf32>
      %144 = vector.shape_cast %143 : vector<8xf32> to vector<8x1xf32>
      %145 = vector.broadcast %144 : vector<8x1xf32> to vector<8x3xf32>
      %146 = arith.mulf %145, %142 : vector<8x3xf32>
      %147 = arith.addf %112, %146 : vector<8x3xf32>
      %c0_52 = arith.constant 0 : index
      %c64 = arith.constant 64 : index
      %148 = vector.load %arg29[%c0_52, %c64] : memref<8x99xf32, #tpu.memory_space<vmem>>, vector<8x32xf32>
      %cst_53 = arith.constant dense<0.000000e+00> : vector<8x32xf32>
      %149 = tpu.matmul %34, %148, %cst_53 {dimension_numbers = #tpu.dot_dimension_numbers<[1], [0], [0], [1], [0, 0, 1, 1], [], []>} : vector<8x8xf32>, vector<8x32xf32>, vector<8x32xf32> -> vector<8x32xf32>
      %150 = vector.extract_strided_slice %53 {offsets = [0, 0], sizes = [8, 1], strides = [1, 1]} : vector<8x4xf32> to vector<8x1xf32>
      %151 = vector.extract_strided_slice %149 {offsets = [0, 0], sizes = [8, 8], strides = [1, 1]} : vector<8x32xf32> to vector<8x8xf32>
      %152 = vector.broadcast %150 : vector<8x1xf32> to vector<8x8xf32>
      %153 = arith.mulf %152, %151 : vector<8x8xf32>
      %154 = vector.extract_strided_slice %53 {offsets = [0, 1], sizes = [8, 1], strides = [1, 1]} : vector<8x4xf32> to vector<8x1xf32>
      %155 = vector.extract_strided_slice %149 {offsets = [0, 8], sizes = [8, 8], strides = [1, 1]} : vector<8x32xf32> to vector<8x8xf32>
      %156 = vector.broadcast %154 : vector<8x1xf32> to vector<8x8xf32>
      %157 = arith.mulf %156, %155 : vector<8x8xf32>
      %158 = vector.extract_strided_slice %53 {offsets = [0, 2], sizes = [8, 1], strides = [1, 1]} : vector<8x4xf32> to vector<8x1xf32>
      %159 = vector.extract_strided_slice %149 {offsets = [0, 16], sizes = [8, 8], strides = [1, 1]} : vector<8x32xf32> to vector<8x8xf32>
      %160 = vector.broadcast %158 : vector<8x1xf32> to vector<8x8xf32>
      %161 = arith.mulf %160, %159 : vector<8x8xf32>
      %162 = vector.extract_strided_slice %53 {offsets = [0, 3], sizes = [8, 1], strides = [1, 1]} : vector<8x4xf32> to vector<8x1xf32>
      %163 = vector.extract_strided_slice %149 {offsets = [0, 24], sizes = [8, 8], strides = [1, 1]} : vector<8x32xf32> to vector<8x8xf32>
      %164 = vector.broadcast %162 : vector<8x1xf32> to vector<8x8xf32>
      %165 = arith.mulf %164, %163 : vector<8x8xf32>
      %166 = tpu.concatenate %153, %157, %161, %165 in 1 : vector<8x8xf32>, vector<8x8xf32>, vector<8x8xf32>, vector<8x8xf32> -> vector<8x32xf32>
      %167 = tpu.concatenate %166, %147 in 1 : vector<8x32xf32>, vector<8x3xf32> -> vector<8x35xf32>
      %168 = vector.broadcast %15 : vector<8x1xf32> to vector<8x35xf32>
      %169 = arith.mulf %167, %168 : vector<8x35xf32>
      %c0_54 = arith.constant 0 : index
      %c0_55 = arith.constant 0 : index
      %170 = vector.load %arg32[%c0_54, %c0_55] : memref<8x35xf32, #tpu.memory_space<vmem>>, vector<8x35xf32>
      %cst_56 = arith.constant dense<0.000000e+00> : vector<8x35xf32>
      %171 = tpu.matmul %7, %169, %cst_56 {dimension_numbers = #tpu.dot_dimension_numbers<[0], [0], [1], [1], [0, 1, 1, 1], [], []>} : vector<8x8xf32>, vector<8x35xf32>, vector<8x35xf32> -> vector<8x35xf32>
      %172 = arith.addf %170, %171 : vector<8x35xf32>
      %c0_57 = arith.constant 0 : index
      %c0_58 = arith.constant 0 : index
      %173 = vector.load %arg32[%c0_57, %c0_58] : memref<8x35xf32, #tpu.memory_space<vmem>>, vector<8x35xf32>
      tpu.vector_store %arg32[%c0_57, %c0_58], %172 {strides = array<i32>} : memref<8x35xf32, #tpu.memory_space<vmem>>, vector<8x35xf32>,
      %c1_i32_59 = arith.constant 1 : i32
      %174 = arith.cmpi eq, %arg1, %c1_i32_59 : i32
      %175 = arith.extui %174 : i1 to i32
      %c0_i32_60 = arith.constant 0 : i32
      %176 = arith.cmpi ne, %175, %c0_i32_60 : i32
      scf.if %176 {
        %c0_61 = arith.constant 0 : index
        %c0_62 = arith.constant 0 : index
        %177 = vector.load %arg32[%c0_61, %c0_62] : memref<8x35xf32, #tpu.memory_space<vmem>>, vector<8x32xf32>
        %c0_63 = arith.constant 0 : index
        %c0_64 = arith.constant 0 : index
        %178 = vector.load %arg9[%c0_63, %c0_64] : memref<32x8xf32, #tpu.memory_space<vmem>>, vector<32x8xf32>
        %cst_65 = arith.constant dense<0.000000e+00> : vector<8x8xf32>
        %179 = tpu.matmul %177, %178, %cst_65 {dimension_numbers = #tpu.dot_dimension_numbers<[1], [0], [0], [1], [0, 0, 1, 1], [], []>} : vector<8x32xf32>, vector<32x8xf32>, vector<8x8xf32> -> vector<8x8xf32>
        %c0_66 = arith.constant 0 : index
        %c0_67 = arith.constant 0 : index
        %180 = vector.load %arg10[%c0_66, %c0_67] : memref<1x8xf32, #tpu.memory_space<vmem>>, vector<1x8xf32>
        %181 = vector.broadcast %180 : vector<1x8xf32> to vector<8x8xf32>
        %182 = arith.addf %179, %181 : vector<8x8xf32>
        %c0_68 = arith.constant 0 : index
        %c32 = arith.constant 32 : index
        %183 = vector.load %arg32[%c0_68, %c32] : memref<8x35xf32, #tpu.memory_space<vmem>>, vector<8x3xf32>
        %cst_69 = arith.constant 0.142857149 : f32
        %184 = vector.broadcast %cst_69 : f32 to vector<8x3xf32>
        %185 = arith.mulf %183, %184 : vector<8x3xf32>
        %186 = tpu.concatenate %182, %185 in 1 : vector<8x8xf32>, vector<8x3xf32> -> vector<8x11xf32>
        %c0_70 = arith.constant 0 : index
        %c0_71 = arith.constant 0 : index
        %187 = vector.load %arg28[%c0_70, %c0_71] : memref<8x11xf32, #tpu.memory_space<vmem>>, vector<8x11xf32>
        tpu.vector_store %arg28[%c0_70, %c0_71], %186 {strides = array<i32>} : memref<8x11xf32, #tpu.memory_space<vmem>>, vector<8x11xf32>,
      } else {
      }
    } else {
    }
    return
  }
  func.func @transform_0(%arg0: i32, %arg1: i32) -> (i32, i32) {
    %c0_i32 = arith.constant 0 : i32
    %c0_i32_0 = arith.constant 0 : i32
    return %arg1, %c0_i32 : i32, i32
  }
  func.func @transform_1(%arg0: i32, %arg1: i32) -> (i32, i32) {
    %c0_i32 = arith.constant 0 : i32
    %c0_i32_0 = arith.constant 0 : i32
    return %arg1, %c0_i32 : i32, i32
  }
  func.func @transform_2(%arg0: i32, %arg1: i32) -> (i32, i32) {
    %c0_i32 = arith.constant 0 : i32
    %c0_i32_0 = arith.constant 0 : i32
    return %arg1, %c0_i32 : i32, i32
  }
  func.func @transform_3(%arg0: i32, %arg1: i32) -> (i32, i32) {
    %c0_i32 = arith.constant 0 : i32
    %c0_i32_0 = arith.constant 0 : i32
    %c0_i32_1 = arith.constant 0 : i32
    return %c0_i32, %c0_i32_0 : i32, i32
  }
  func.func @transform_4(%arg0: i32, %arg1: i32) -> (i32, i32) {
    %c0_i32 = arith.constant 0 : i32
    %c0_i32_0 = arith.constant 0 : i32
    %c0_i32_1 = arith.constant 0 : i32
    return %c0_i32, %c0_i32_0 : i32, i32
  }
  func.func @transform_5(%arg0: i32, %arg1: i32) -> (i32, i32) {
    %c0_i32 = arith.constant 0 : i32
    %c0_i32_0 = arith.constant 0 : i32
    %c0_i32_1 = arith.constant 0 : i32
    return %c0_i32, %c0_i32_0 : i32, i32
  }
  func.func @transform_6(%arg0: i32, %arg1: i32) -> (i32, i32) {
    %c0_i32 = arith.constant 0 : i32
    %c0_i32_0 = arith.constant 0 : i32
    %c0_i32_1 = arith.constant 0 : i32
    return %c0_i32, %c0_i32_0 : i32, i32
  }
  func.func @transform_7(%arg0: i32, %arg1: i32) -> (i32, i32) {
    %c0_i32 = arith.constant 0 : i32
    %c0_i32_0 = arith.constant 0 : i32
    %c0_i32_1 = arith.constant 0 : i32
    return %c0_i32, %c0_i32_0 : i32, i32
  }
  func.func @transform_8(%arg0: i32, %arg1: i32) -> (i32, i32) {
    %c0_i32 = arith.constant 0 : i32
    %c0_i32_0 = arith.constant 0 : i32
    %c0_i32_1 = arith.constant 0 : i32
    return %c0_i32, %c0_i32_0 : i32, i32
  }
  func.func @transform_9(%arg0: i32, %arg1: i32) -> (i32, i32) {
    %c0_i32 = arith.constant 0 : i32
    %c0_i32_0 = arith.constant 0 : i32
    %c0_i32_1 = arith.constant 0 : i32
    return %c0_i32, %c0_i32_0 : i32, i32
  }
  func.func @transform_10(%arg0: i32, %arg1: i32) -> (i32, i32) {
    %c0_i32 = arith.constant 0 : i32
    %c0_i32_0 = arith.constant 0 : i32
    %c0_i32_1 = arith.constant 0 : i32
    return %c0_i32, %c0_i32_0 : i32, i32
  }
  func.func @transform_11(%arg0: i32, %arg1: i32) -> (i32, i32) {
    %c0_i32 = arith.constant 0 : i32
    %c0_i32_0 = arith.constant 0 : i32
    %c0_i32_1 = arith.constant 0 : i32
    return %c0_i32, %c0_i32_0 : i32, i32
  }
  func.func @transform_12(%arg0: i32, %arg1: i32) -> (i32, i32) {
    %c0_i32 = arith.constant 0 : i32
    %c0_i32_0 = arith.constant 0 : i32
    %c0_i32_1 = arith.constant 0 : i32
    return %c0_i32, %c0_i32_0 : i32, i32
  }
  func.func @transform_13(%arg0: i32, %arg1: i32) -> (i32, i32) {
    %c0_i32 = arith.constant 0 : i32
    %c0_i32_0 = arith.constant 0 : i32
    %c0_i32_1 = arith.constant 0 : i32
    return %c0_i32, %c0_i32_0 : i32, i32
  }
  func.func @transform_14(%arg0: i32, %arg1: i32) -> (i32, i32) {
    %c0_i32 = arith.constant 0 : i32
    %c0_i32_0 = arith.constant 0 : i32
    %c0_i32_1 = arith.constant 0 : i32
    return %c0_i32, %c0_i32_0 : i32, i32
  }
  func.func @transform_15(%arg0: i32, %arg1: i32) -> (i32, i32) {
    %c0_i32 = arith.constant 0 : i32
    %c0_i32_0 = arith.constant 0 : i32
    %c0_i32_1 = arith.constant 0 : i32
    return %c0_i32, %c0_i32_0 : i32, i32
  }
  func.func @transform_16(%arg0: i32, %arg1: i32) -> (i32, i32) {
    %c0_i32 = arith.constant 0 : i32
    %c0_i32_0 = arith.constant 0 : i32
    %c0_i32_1 = arith.constant 0 : i32
    return %c0_i32, %c0_i32_0 : i32, i32
  }
  func.func @transform_17(%arg0: i32, %arg1: i32) -> (i32, i32) {
    %c0_i32 = arith.constant 0 : i32
    %c0_i32_0 = arith.constant 0 : i32
    %c0_i32_1 = arith.constant 0 : i32
    return %c0_i32, %c0_i32_0 : i32, i32
  }
  func.func @transform_18(%arg0: i32, %arg1: i32) -> (i32, i32) {
    %c0_i32 = arith.constant 0 : i32
    %c0_i32_0 = arith.constant 0 : i32
    %c0_i32_1 = arith.constant 0 : i32
    return %c0_i32, %c0_i32_0 : i32, i32
  }
  func.func @transform_19(%arg0: i32, %arg1: i32) -> (i32, i32) {
    %c0_i32 = arith.constant 0 : i32
    %c0_i32_0 = arith.constant 0 : i32
    %c0_i32_1 = arith.constant 0 : i32
    return %c0_i32, %c0_i32_0 : i32, i32
  }
  func.func @transform_20(%arg0: i32, %arg1: i32) -> (i32, i32) {
    %c0_i32 = arith.constant 0 : i32
    %c0_i32_0 = arith.constant 0 : i32
    %c0_i32_1 = arith.constant 0 : i32
    return %c0_i32, %c0_i32_0 : i32, i32
  }
  func.func @transform_21(%arg0: i32, %arg1: i32) -> (i32, i32) {
    %c0_i32 = arith.constant 0 : i32
    %c0_i32_0 = arith.constant 0 : i32
    %c0_i32_1 = arith.constant 0 : i32
    return %c0_i32, %c0_i32_0 : i32, i32
  }
  func.func @transform_22(%arg0: i32, %arg1: i32) -> (i32, i32) {
    %c0_i32 = arith.constant 0 : i32
    %c0_i32_0 = arith.constant 0 : i32
    %c0_i32_1 = arith.constant 0 : i32
    return %c0_i32, %c0_i32_0 : i32, i32
  }
  func.func @transform_23(%arg0: i32, %arg1: i32) -> (i32, i32) {
    %c0_i32 = arith.constant 0 : i32
    %c0_i32_0 = arith.constant 0 : i32
    %c0_i32_1 = arith.constant 0 : i32
    return %c0_i32, %c0_i32_0 : i32, i32
  }
  func.func @transform_24(%arg0: i32, %arg1: i32) -> (i32, i32) {
    %c0_i32 = arith.constant 0 : i32
    %c0_i32_0 = arith.constant 0 : i32
    %c0_i32_1 = arith.constant 0 : i32
    return %c0_i32, %c0_i32_0 : i32, i32
  }
  func.func @transform_25(%arg0: i32, %arg1: i32) -> (i32, i32) {
    %c0_i32 = arith.constant 0 : i32
    %c0_i32_0 = arith.constant 0 : i32
    %c0_i32_1 = arith.constant 0 : i32
    return %c0_i32, %c0_i32_0 : i32, i32
  }
  func.func @transform_26(%arg0: i32, %arg1: i32) -> (i32, i32) {
    %c0_i32 = arith.constant 0 : i32
    %c0_i32_0 = arith.constant 0 : i32
    %c0_i32_1 = arith.constant 0 : i32
    return %c0_i32, %c0_i32_0 : i32, i32
  }
}

</mosaic_0001>

<bundles_post_ra>
// kernel: tpu_custom_call.1
= control target key start
LH: loop header
LB: loop body
LE: loop exit
PB: predicated region body
PF: predicated region fallthrough
CT: control target
= control target key end

     0   :  { %s3929_s0 = inlined_call_operand.vmem [shape: s32[16,1], index: 0, kind: input, shape index: {}]   ;;  %s3930_s1 = inlined_call_operand.vmem [shape: s32[16,1], index: 1, kind: input, shape index: {}]   ;;  %s3931_s2 = inlined_call_operand.vmem [shape: f32[16,1], index: 2, kind: input, shape index: {}]   ;;  %s3932_s3 = inlined_call_operand.vmem [shape: f32[8,8], index: 3, kind: input, shape index: {}]   ;;  %s3933_s4 = inlined_call_operand.vmem [shape: f32[8,3], index: 4, kind: input, shape index: {}]   ;;  %s3934_s5 = inlined_call_operand.vmem [shape: f32[8,96], index: 5, kind: input, shape index: {}]   ;;  %s3935_s6 = inlined_call_operand.vmem [shape: f32[1,96], index: 6, kind: input, shape index: {}]   ;;  %s3936_s7 = inlined_call_operand.vmem [shape: f32[32,8], index: 7, kind: input, shape index: {}]   ;;  %s3937_s8 = inlined_call_operand.vmem [shape: f32[1,8], index: 8, kind: input, shape index: {}]   ;;  %s3938_s9 = inlined_call_operand.vmem [shape: f32[1,8], index: 9, kind: input, shape index: {}]   ;;  %s3939_s10 = inlined_call_operand.vmem [shape: f32[1,8], index: 10, kind: input, shape index: {}]   ;;  %s3940_s11 = inlined_call_operand.vmem [shape: f32[24,4], index: 11, kind: input, shape index: {}]   ;;  %s3941_s12 = inlined_call_operand.vmem [shape: f32[1,4], index: 12, kind: input, shape index: {}]   ;;  %s3942_s13 = inlined_call_operand.vmem [shape: f32[23,16], index: 13, kind: input, shape index: {}]   ;;  %s3943_s14 = inlined_call_operand.vmem [shape: f32[1,16], index: 14, kind: input, shape index: {}]   ;;  %s3944_s15 = inlined_call_operand.vmem [shape: f32[16,16], index: 15, kind: input, shape index: {}]   ;;  %s3945_s16 = inlined_call_operand.vmem [shape: f32[1,16], index: 16, kind: input, shape index: {}]   ;;  %s3946_s17 = inlined_call_operand.vmem [shape: f32[26,16], index: 17, kind: input, shape index: {}]   ;;  %s3947_s18 = inlined_call_operand.vmem [shape: f32[1,16], index: 18, kind: input, shape index: {}]   ;;  %s3948_s19 = inlined_call_operand.vmem [shape: f32[16,16], index: 19, kind: input, shape index: {}]   ;;  %s3949_s20 = inlined_call_operand.vmem [shape: f32[1,16], index: 20, kind: input, shape index: {}]   ;;  %s3950_s21 = inlined_call_operand.vmem [shape: f32[16,36], index: 21, kind: input, shape index: {}]   ;;  %s3951_s22 = inlined_call_operand.vmem [shape: f32[1,36], index: 22, kind: input, shape index: {}]   ;;  %s3952_s23 = inlined_call_operand.vmem [shape: f32[32,8], index: 23, kind: input, shape index: {}]   ;;  %s3953_s24 = inlined_call_operand.vmem [shape: f32[1,8], index: 24, kind: input, shape index: {}]   ;;  %s3954_s25 = inlined_call_operand.vmem [shape: f32[1,4], index: 25, kind: input, shape index: {}]   ;;  %s3955_s26 = inlined_call_operand.hbm [shape: f32[8,11], index: 26, kind: output, shape index: {}]  }
   0x1   :  { %3961 = sst [smem:[#allocation15_spill]] %s3929_s0 }
   0x2   :  { %3962 = sst [smem:[#allocation16_spill]] %s3930_s1 }
   0x3   :  { %3963 = sst [smem:[#allocation17_spill]] %s3931_s2 }
   0x4   :  { %3964 = sst [smem:[#allocation18_spill]] %s3932_s3 }
   0x5   :  { %3965 = sst [smem:[#allocation19_spill]] %s3933_s4 }
   0x6   :  { %3966 = sst [smem:[#allocation20_spill]] %s3934_s5 }
   0x7   :  { %3967 = sst [smem:[#allocation21_spill]] %s3935_s6 }
   0x8   :  { %3968 = sst [smem:[#allocation22_spill]] %s3936_s7 }
   0x9   :  { %3969 = sst [smem:[#allocation23_spill]] %s3937_s8 }
   0xa   :  { %3970 = sst [smem:[#allocation24_spill]] %s3938_s9 }
   0xb   :  { %3971 = sst [smem:[#allocation25_spill]] %s3939_s10 }
   0xc   :  { %3972 = sst [smem:[#allocation26_spill]] %s3954_s25 }
   0xd   :  { %3973 = sst [smem:[#allocation27_spill]] %s3955_s26 }
   0xe   :  { %31 = vsyncpa [#allocation8], 0  ;;  %s3505_s27 = smov 0   ;;  %s3507_s3 = smov 0  }
   0xf   :  { %s3509_s7 = smov 0   ;;  %s3511_s28 = smov 0  }
  0x10   :  { %s3513_s8 = smov 0  }
  0x11 LB: > { %3974 = sst [smem:[#allocation10_spill]] %s3304_s7  ;;  %s46_s29 = sadd.s32 1, %s3304_s7  ;;  %s3312_s8 = sphi %s3513_s8, %s37_s8   ;;  %s3308_s28 = sphi %s3511_s28, %s4002_s28   ;;  %s3304_s7 = sphi %s3509_s7, %s4001_s7   ;;  %s3300_s3 = sphi %s3507_s3, %s4000_s3   ;;  %s3296_s27 = sphi %s3505_s27, %s3999_s27  }
  0x12   : > { %3975 = sst [smem:[#allocation11_spill]] %s3308_s28  ;;  %p47_p0 = scmp.ge.s32.totalorder %s46_s29, 2 }
  0x13   : > { %3976 = sst [smem:[#allocation12_spill]] %s3312_s8  ;;  %s49_s0 = sadd.s32 1, %s3308_s28 }
  0x14   : > { %p2846_p1 = scmp.ge.s32.totalorder %s3312_s8, 1  ;;  %p737_p2 = scmp.lt.s32.totalorder %s3312_s8, 7 }
  0x15   : > { %s4004_s29 = smov (%p47_p0, %s46_s29), 0  ;;  %s4006_s0 = smov (!%p47_p0, %s49_s0), %s3308_s28 }
  0x16   : > { %3977 = sst [smem:[#allocation13_spill]] %s4004_s29  ;;  %p738_p3 = pnand %p2846_p1, %p737_p2 }
  0x17   : > { %p51_p4 = scmp.ge.s32.totalorder %s4006_s0, 3  ;;  %p809_p5 = scmp.lt.s32.totalorder (!%p738_p3), %s3296_s27, 1  ;;  %v822_v0 = vlaneseq (!%p738_p3)  ;;  %v3314_v1 = vmov (!%p738_p3), 0   ;;  %v3315_v6 = vmov (!%p738_p3), 0.0  }
  0x18   : > { %741 = sbr.rel (%p738_p3) target bundleno = 4797 (0x12bd), region = 124  ;;  %s3542_s9 = sshll.u32 (!%p738_p3), %s3296_s27, 3  ;;  %3207 = vset.pattern.permute.xlu0 (!%p738_p3), %v3314_v1 }
  0x19   : > { %s4008_s0 = smov (%p51_p4, %s4006_s0), 0  ;;  %v833_v2 = vstv (!%p738_p3), %s3542_s9  ;;  %v3546_v3 = vshrl.u32 (!%p738_p3), %v822_v0, 7  ;;  %s3979_s6 = sld [smem:[#allocation15_spill]] (!%p738_p3)  ;;  %v3571_v8 = vand.u32 (!%p738_p3), 127, %v822_v0 }
  0x1a   : > { %3978 = sst [smem:[#allocation14_spill]] %s4008_s0  ;;  %s3981_s8 = sld [smem:[#allocation17_spill]] (!%p738_p3) }
  0x1b   : > { %v834_v4 = vadd.s32 (!%p738_p3), %v833_v2, %v3546_v3  ;;  %s3980_s29 = sld [smem:[#allocation16_spill]] (!%p738_p3)  ;;  %p838_p6 = scmp.eq.s32.totalorder (!%p738_p3), %s3300_s3, 0 }
  0x1c   : > { %p839_p7 = scmp.eq.s32.totalorder (!%p738_p3), %s3296_s27, 0 }
  0x1d   : > { %vm835_vm0 = vcmp.lt.s32.totalorder (!%p738_p3), %v834_v4, 16 }
  0x1e   : > { %v3566_v7 = vsel (!%p738_p3), %vm835_vm0, 1.0, %v3315_v6  ;;  %p840_p8 = pnand (!%p738_p3), %p839_p7, %p838_p6 }
  0x1f   : > { %s810_s30 = scalar_select %p809_p5, %s3296_s27, 1 }
  0x20   : > { %vm966_vm2 = vcmask (!%p840_p8), 60416   ;;  %vm969_vm3 = vcmask (!%p840_p8), 285696   ;;  %v3316_v12 = vmov (!%p840_p8), 0.0   ;;  %v3317_v13 = vmov (!%p840_p8), -1e+30   ;;  %s3983_s0 = sld [smem:[#allocation18_spill]] (!%p840_p8) }
  0x21   : > { %s3548_s2 = sshll.u32 %s810_s30, 3  ;;  %2954 = vmatprep.subr.mxu0 (!%p840_p8), %v3316_v12  ;;  %967 = vst.msk [vmem:[#allocation3] sm:$0xf] (!%p840_p8), %vm966_vm2, %v3317_v13  ;;  %968 = vst.msk [vmem:[#allocation4] sm:$0xf] (!%p840_p8), %vm966_vm2, %v3316_v12  ;;  %vm853_vm4 = vcmask (!%p840_p8), 64512  }
  0x22   : > { %s812_s1 = scalar_lea.vmem %s3979_s6, %s3548_s2  ;;  %s3559_s28 = scalar_lea.vmem %s3980_s29, %s3548_s2  ;;  %970 = vst.msk [vmem:[#allocation5] sm:$0xff] (!%p840_p8), %vm969_vm3, %v3316_v12  ;;  %vm928_vm5 = vcmask (!%p840_p8), 23552   ;;  %vm3318_vm6 = vmmov (!%p840_p8), 0   ;;  %vm955_vm9 = vcmask (!%p840_p8), 785408   ;;  %vm964_vm10 = vcmask (!%p840_p8), 810752  }
  0x23   : > { %s820_s25 = scalar_lea.vmem %s3981_s8, %s3548_s2  ;;  %v824_v5 = vld [vmem:[%s812_s1] sm:$0xff]  ;;  %s3982_s8 = sld [smem:[#allocation20_spill]] (!%p840_p8)  ;;  %2956 = vmatprep.mubr.msk.f32.mxu0 (!%p840_p8), %vm3318_vm6, %v3316_v12 }
  0x24   : > { %826 = vperm.xlu0 %3207, %v824_v5   ;;  %s3984_s10 = sld [smem:[#allocation19_spill]] (!%p840_p8)  ;;  %s3319_s6 = smov (!%p840_p8), 96  }
  0x25   : > { %s3985_s7 = sld [smem:[#allocation21_spill]] (!%p840_p8) }
  0x26   : > { %v844_v14 = vld [vmem:[%s3983_s0] sm:$0xff] (!%p840_p8) }
  0x29   : > { %v845_v11 = vld [vmem:[%s3982_s8] sm:$0xff] (!%p840_p8) }
  0x2a   : > { %v927_v15 = vld [vmem:[%s3984_s10] sm:$0xff] (!%p840_p8)  ;;  %2955 = vmatpush3.msra.mxu0 (!%p840_p8), %v845_v11 }
  0x2b   : > { %v929_v16 = vsel (!%p840_p8), %vm928_vm5, %v927_v15, 0.0  ;;  %2957 = vmatmul.mubr.msk.f32.vlgmr.msra.gmra.mrb[0].mxu0 (!%p840_p8), %vm853_vm4, %v844_v14  ;;  %v2853_v42 = vld [vmem:[%s3985_s7] ss:$0 sm:$0xff] (!%p840_p8) }
  0x2c   : > { %v930_v17 = vrot.slane (!%p840_p8), %v929_v16, 4 }
  0x2e   : > { %v931_v18 = vadd.f32 (!%p840_p8), %v930_v17, %v929_v16 }
  0x30   : > { %v932_v19 = vrot.slane (!%p840_p8), %v931_v18, 2 }
  0x32   : > { %v933_v20 = vadd.f32 (!%p840_p8), %v932_v19, %v931_v18 }
  0x34   : > { %v934_v21 = vrot.slane (!%p840_p8), %v933_v20, 1 }
  0x36   : > { %v935_v22 = vadd.f32 (!%p840_p8), %v934_v21, %v933_v20 }
  0x38   : > { %v937_v23 = vmul.f32 (!%p840_p8), 0.125, %v935_v22 }
  0x3a   : > { %v938_v24 = vsub.f32 (!%p840_p8), %v927_v15, %v937_v23 }
  0x3c   : > { %v939_v25 = vmul.f32 (!%p840_p8), %v938_v24, %v938_v24 }
  0x3e   : > { %v940_v26 = vsel (!%p840_p8), %vm928_vm5, %v939_v25, 0.0 }
  0x3f   : > { %v941_v27 = vrot.slane (!%p840_p8), %v940_v26, 4 }
  0x41   : > { %v942_v28 = vadd.f32 (!%p840_p8), %v941_v27, %v940_v26 }
  0x43   : > { %v943_v29 = vrot.slane (!%p840_p8), %v942_v28, 2 }
  0x45   : > { %v944_v30 = vadd.f32 (!%p840_p8), %v943_v29, %v942_v28 }
  0x47   : > { %v945_v31 = vrot.slane (!%p840_p8), %v944_v30, 1 }
  0x49   : > { %v946_v32 = vadd.f32 (!%p840_p8), %v945_v31, %v944_v30 }
  0x4b   : > { %v947_v33 = vmul.f32 (!%p840_p8), 0.14285715, %v946_v32 }
  0x4d   : > { %3208 = vrsqrt.f32 (!%p840_p8), %v947_v33  ;;  %vm950_vm7 = vcmp.eq.f32.partialorder (!%p840_p8), %v947_v33, inf  ;;  %v953_v35 = vand.u32 (!%p840_p8), 2147483648, %v947_v33  ;;  %vm952_vm8 = vcmp.eq.f32.partialorder (!%p840_p8), %v947_v33, 0.0 }
  0x57   : > { %v3209_v34 = vpop.eup (!%p840_p8), %3208 }
  0x58   : > { %v949_v36 = vmul.f32 (!%p840_p8), %v3209_v34, %v947_v33 }
  0x5a   : > { %v951_v37 = vsel (!%p840_p8), %vm950_vm7, %v947_v33, %v949_v36 }
  0x5b   : > { %v954_v38 = vsel (!%p840_p8), %vm952_vm8, %v953_v35, %v951_v37 }
  0x5c   : > { %v957_v39 = vadd.f32 (!%p840_p8), 1e-08, %v954_v38 }
  0x5e   : > { %3210 = vrcp.f32 (!%p840_p8), %v957_v39 }
  0x68   : > { %v3211_v40 = vpop.eup (!%p840_p8), %3210 }
  0x69   : > { %v959_v41 = vmul.f32 (!%p840_p8), %v3211_v40, %v938_v24 }
  0x6b   : > { %961 = vrot.lane.b32.xlu0 (!%p840_p8), %v959_v41, %s3319_s6 }
  0x9f   : > { %843 = sbr.rel (%p840_p8) target bundleno = 259 (0x103), region = 128 }
  0xa3   : > { %v3573_v9 = vpop.permute.xlu0 %826 }
  0xa4   : > { %vm828_vm1 = vcmp.eq.s32.totalorder %v3571_v8, %v3573_v9 }
  0xa5   : > { %v3580_v10 = vsel %vm828_vm1, 1.0, %v3315_v6 }
  0xdd   : > { %v962_v46 = vpop.permute.xlu0 %961 }
  0xfe   : > { %v923_v43 = vpop.f32.mrb[0].mxu0 }
  0xff   : > { %v924_v44 = vadd.f32 %v2853_v42, %v923_v43  ;;  %v2958_v45 = vpop.f32.mrb[1].mxu0 }
 0x101   : > { %956 = vst.msk [vmem:[#allocation2] sm:$0xff] %vm955_vm9, %v924_v44 }
 0x102   : > { %965 = vst.msk [vmem:[#allocation2] sm:$0xff] %vm964_vm10, %v962_v46 }
 0x103 PF: > { %p2855_p9 = scmp.ne.s32.totalorder %s3300_s3, 0 }
 0x104   : > { %v974_v47 = vld [vmem:[%s3559_s28] sm:$0xff] (!%p2855_p9)  ;;  %v3320_v49 = vmov (!%p2855_p9), 0   ;;  %s3321_s8 = smov (!%p2855_p9), 104   ;;  %s3986_s0 = sld [smem:[#allocation19_spill]] (!%p2855_p9)  ;;  %v3322_v51 = vmov (!%p2855_p9), 0.0   ;;  %vm3326_vm11 = vmmov (!%p2855_p9), 0  }
 0x105   : > { %973 = sbr.rel (%p2855_p9) target bundleno = 1819 (0x71b), region = 132  ;;  %3212 = vset.pattern.permute.xlu0 (!%p2855_p9), %v3320_v49  ;;  %2959 = vmatprep.subr.mxu0 (!%p2855_p9), %v3322_v51  ;;  %s3323_s30 = smov (!%p2855_p9), 40   ;;  %vm996_vm12 = vcmask (!%p2855_p9), 64512   ;;  %vm998_vm13 = vcmask (!%p2855_p9), 326656   ;;  %vm1000_vm14 = vcmask (!%p2855_p9), 351232   ;;  %v1205_v13 = vld [vmem:[%s3942_s13] sm:$0xff] (!%p2855_p9) }
 0x106   : > { %976 = vperm.xlu0 (!%p2855_p9), %3212, %v974_v47   ;;  %2964 = vmatprep.subr.mxu1 (!%p2855_p9), %v3322_v51  ;;  %s3324_s5 = smov (!%p2855_p9), 8   ;;  %s3325_s10 = smov (!%p2855_p9), 75   ;;  %v1206_v14 = vld [vmem:[%s3942_s13 + $0x8] sm:$0xff] (!%p2855_p9)  ;;  %v3327_v15 = vmov (!%p2855_p9), 0.0|0.0   ;;  %vm1160_vm0 = vcmask (!%p2855_p9), 23552   ;;  %vm1219_vm2 = vcmask (!%p2855_p9), 1046528  }
 0x107   : > { %2961 = vmatprep.mubr.msk.f32.mxu0 (!%p2855_p9), %vm3326_vm11, %v3322_v51  ;;  %2966 = vmatprep.mubr.msk.f32.mxu1 (!%p2855_p9), %vm3326_vm11, %v3322_v51  ;;  %s3987_s26 = sld [smem:[#allocation18_spill]] (!%p2855_p9)  ;;  %v3072_v16 = vpack.c.bf16 (!%p2855_p9), %v1206_v14, %v1205_v13  ;;  %s3330_s6 = smov (!%p2855_p9), 105   ;;  %v1207_v19 = vld [vmem:[%s3942_s13 + $0x10] sm:$0x7f] (!%p2855_p9)  ;;  %vm1199_vm3 = vcmask (!%p2855_p9), 130048   ;;  %vm1201_vm4 = vcmask (!%p2855_p9), 138240  }
 0x108   : > { %vm1203_vm5 = vcmask (!%p2855_p9), 162816   ;;  %vm1215_vm6 = vcmask (!%p2855_p9), 187392   ;;  %v1300_v28 = vld [vmem:[%s3944_s15] sm:$0xff] (!%p2855_p9)  ;;  %v1301_v29 = vld [vmem:[%s3944_s15 + $0x8] sm:$0xff] (!%p2855_p9)  ;;  %v1389_v43 = vld [vmem:[%s3940_s11 + $0x10] sm:$0xff] (!%p2855_p9)  ;;  %s3333_s1 = smov (!%p2855_p9), 96  }
 0x109   : > { %v984_v48 = vld [vmem:[#allocation2] sm:$0xff] (!%p2855_p9)  ;;  %v3075_v30 = vpack.c.bf16 (!%p2855_p9), %v1301_v29, %v1300_v28  ;;  %v1388_v41 = vld [vmem:[%s3940_s11 + $0x8] sm:$0xff] (!%p2855_p9)  ;;  %s3988_s4 = sld [smem:[#allocation24_spill]] (!%p2855_p9)  ;;  %vm1397_vm7 = vcmask (!%p2855_p9), 195584   ;;  %s3337_s7 = smov (!%p2855_p9), 4   ;;  %vm1497_vm9 = vcmask (!%p2855_p9), 7168  }
 0x10a   : > { %1002 = vrot.lane.b32.xlu1 (!%p2855_p9), %v984_v48, %s3321_s8  ;;  %v983_v50 = vld [vmem:[%s3986_s0] sm:$0xff] (!%p2855_p9)  ;;  %986 = vrot.lane.b32.xlu0 (!%p2855_p9), %v984_v48, %s3324_s5  ;;  %vm1499_vm10 = vcmask (!%p2855_p9), 15360  }
 0x10b   : > { %v2862_v31 = vld [vmem:[%s3943_s14] ss:$0 sm:$0xff] (!%p2855_p9) }
 0x10c   : > { %v1387_v40 = vld [vmem:[%s3940_s11] sm:$0xff] }
 0x10d   : > { %v982_v54 = vld [vmem:[%s3987_s26] sm:$0xff]  ;;  %v3078_v42 = vpack.c.bf16 %v1388_v41, %v1387_v40  ;;  %s3336_s26 = smov 114  }
 0x10e   : > { %990 = vrot.lane.b32.xlu1 %v983_v50, %s3323_s30  ;;  %993 = vrot.lane.b32.xlu0 %v984_v48, %s3325_s10  ;;  %s3328_s30 = smov 88   ;;  %s3329_s10 = smov 102   ;;  %v2866_v44 = vld [vmem:[%s3945_s16] ss:$0 sm:$0xff] }
 0x10f   : > { %v2859_v48 = vld [vmem:[%s3988_s4] ss:$0 sm:$0xff]  ;;  %s1535_s4 = scalar_lea.vmem [#allocation6], %s3542_s9 }
 0x17c   : > { %v1003_v52 = vpop.permute.xlu1 %1002 }
 0x17d   : > { %v1005_v56 = vsel %vm996_vm12, %v982_v54, %v1003_v52 }
 0x180   : > { %v991_v57 = vpop.permute.xlu1 %990 }
 0x181   : > { %v1006_v59 = vsel %vm998_vm13, %v1005_v56, %v991_v57 }
 0x185   : > { %v977_v53 = vpop.permute.xlu0 %976 }
 0x186   : > { %vm978_vm15 = vcmp.eq.s32.totalorder %v3571_v8, %v977_v53 }
 0x187   : > { %v2856_v0 = vsel %vm978_vm15, 1.0, %v3322_v51  ;;  %vm1533_vm15 = vcmask 236544  }
 0x189   : > { %v987_v55 = vpop.permute.xlu0 %986 }
 0x18a   : > { %v997_v58 = vsel %vm996_vm12, %v982_v54, %v987_v55 }
 0x18b   : > { %v999_v61 = vsel %vm998_vm13, %v997_v58, %v991_v57 }
 0x18d   : > { %v994_v60 = vpop.permute.xlu0 %993 }
 0x18e   : > { %v1001_v62 = vsel %vm1000_vm14, %v999_v61, %v994_v60  ;;  %v1007_v63 = vsel %vm1000_vm14, %v1006_v59, %v994_v60  ;;  %vm1531_vm14 = vcmask 211968  }
 0x18f   : > { %2960 = vmatpush3.msra.mxu0 %v1001_v62  ;;  %2965 = vmatpush3.msra.mxu1 %v1007_v63 }
 0x190   : > { %2962 = vmatmul.mubr.msk.f32.vlgmr.msra.gmra.mrb[0].mxu0 %vm996_vm12, %v3580_v10  ;;  %2967 = vmatmul.mubr.msk.f32.vlgmr.msra.gmra.mrb[0].mxu1 %vm996_vm12, %v2856_v0 }
 0x191   : > { %2975 = vmatprep.mubr.msk.f32.mxu0 %vm3326_vm11, %v3322_v51  ;;  %2982 = vmatprep.mubr.msk.f32.mxu1 %vm3326_vm11, %v3322_v51 }
 0x192   : > { %3071 = vmatprep.subr.bf16.mxu0 %v3327_v15  ;;  %3074 = vmatprep.subr.bf16.mxu1 %v3327_v15 }
 0x193   : > { %3073 = vmatpush3.bf16.msra.mxu0 %v3072_v16  ;;  %3076 = vmatpush3.bf16.msra.mxu1 %v3075_v30 }
 0x194   : > { %2973 = vmatprep.subr.mxu0 %v3322_v51  ;;  %3077 = vmatprep.subr.bf16.mxu1 %v3327_v15 }
 0x197   : > { %2974 = vmatpush3.msk.msra.mxu0 %vm1219_vm2, %v1207_v19  ;;  %vm1538_vm2 = vcmp.gt.f32.partialorder %v3580_v10, 0.0 }
 0x263   : > { %v3622_v1 = vpop.f32.mrb[0].mxu0  ;;  %v3624_v2 = vpop.f32.mrb[0].mxu1 }
 0x264   : > { %v2963_v4 = vpop.f32.mrb[1].mxu0  ;;  %v2968_v5 = vpop.f32.mrb[1].mxu1  ;;  %v3628_v6 = vsub.f32 %v3622_v1, %v3624_v2  ;;  %v3632_v11 = vmul.f32 %v3624_v2, %v3622_v1 }
 0x266   : > { %v1155_v12 = vmul.f32 %v3628_v6, %v3628_v6 }
 0x268   : > { %1157 = vrot.lane.b32.xlu1 %v1155_v12, %s3328_s30  ;;  %v981_v12 = vld [vmem:[%s820_s25] sm:$0xff] }
 0x269   : > { %vm1504_vm8 = vcmp.gt.f32.partialorder %v981_v12, 0.0 }
 0x26a   : > { %v1505_v13 = vsel %vm1504_vm8, 1, %v3320_v49 }
 0x26c   : > { %1188 = vrot.lane.b32.xlu1 %v3624_v2, %s3324_s5 }
 0x270   : > { %1192 = vrot.lane.b32.xlu1 %v3622_v1, %s3329_s10  ;;  %s3331_s10 = smov 120  }
 0x274   : > { %1195 = vrot.lane.b32.xlu1 %v3624_v2, %s3330_s6  ;;  %s3332_s6 = smov 112  }
 0x2da   : > { %v1158_v17 = vpop.permute.xlu1 %1157 }
 0x2db   : > { %v1161_v18 = vsel %vm1160_vm0, %v1158_v17, 0.0 }
 0x2dc   : > { %1162 = vadd.xlane.f32.xlu0 %v1161_v18 }
 0x2de   : > { %v1189_v20 = vpop.permute.xlu1 %1188 }
 0x2df   : > { %v1198_v22 = vsel %vm996_vm12, %v3622_v1, %v1189_v20 }
 0x2e2   : > { %v1193_v21 = vpop.permute.xlu1 %1192 }
 0x2e6   : > { %v1196_v25 = vpop.permute.xlu1 %1195 }
 0x369   : > { %v1163_v23 = vpop.xlane.xlu0 %1162 }
 0x36a   : > { %v1200_v24 = vsel %vm1199_vm3, %v1198_v22, %v1163_v23  ;;  %v1171_v50 = vmul.f32 %v2859_v48, %v1163_v23 }
 0x36b   : > { %v1202_v26 = vsel %vm1201_vm4, %v1200_v24, %v1193_v21  ;;  %vm1590_vm4 = vcmask 1041408  }
 0x36c   : > { %v1204_v27 = vsel %vm1203_vm5, %v1202_v26, %v1196_v25 }
 0x36d   : > { %2976 = vmatmul.mubr.msk.f32.vlgmr.msra.gmra.mrb[2].mxu0 %vm1215_vm6, %v1204_v27 }
 0x440   : > { %v1289_v32 = vpop.f32.mrb[2].mxu0 }
 0x441   : > { %v1290_v33 = vadd.f32 %v2862_v31, %v1289_v32  ;;  %v2977_v34 = vpop.f32.mrb[3].mxu0 }
 0x443   : > { %v2865_v35 = vmul.f32 -1.442695, %v1290_v33 }
 0x445   : > { %3217 = vpow2.f32 %v2865_v35 }
 0x44f   : > { %v3218_v36 = vpop.eup %3217 }
 0x450   : > { %v1296_v37 = vadd.f32 1.0, %v3218_v36  ;;  %v3339_v36 = vmov 3  }
 0x452   : > { %3219 = vrcp.f32 %v1296_v37  ;;  %v3340_v37 = vmov 1  }
 0x45c   : > { %v3220_v38 = vpop.eup %3219 }
 0x45d   : > { %v1299_v39 = vmul.f32 %v3220_v38, %v1290_v33 }
 0x45f   : > { %2983 = vmatmul.mubr.msk.f32.vlgmr.msra.gmra.mrb[2].mxu1 %vm1199_vm3, %v1299_v39  ;;  %vm1588_vm3 = vcmask 1040384  }
 0x460   : > { %2991 = vmatprep.mubr.msk.f32.mxu1 %vm3326_vm11, %v3322_v51  ;;  %3079 = vmatpush3.bf16.msra.mxu1 %v3078_v42  ;;  %vm1527_vm11 = vcmask 31744  }
 0x461   : > { %2989 = vmatprep.subr.mxu1 %v3322_v51 }
 0x464   : > { %2990 = vmatpush3.msra.mxu1 %v1389_v43 }
 0x532   : > { %v1378_v45 = vpop.f32.mrb[2].mxu1 }
 0x533   : > { %v1379_v46 = vadd.f32 %v2866_v44, %v1378_v45  ;;  %v2984_v47 = vpop.f32.mrb[3].mxu1 }
 0x535   : > { %1383 = vrot.lane.b32.xlu1 %v1379_v46, %s3324_s5  ;;  %s3989_s5 = sld [smem:[#allocation25_spill]] }
 0x539   : > { %1473 = vrot.lane.b32.xlu1 %v3632_v11, %s3331_s10 }
 0x53b   : > { %v2860_v51 = vld [vmem:[%s3989_s5] ss:$0 sm:$0xff] }
 0x53c   : > { %v1179_v52 = vadd.f32 %v2860_v51, %v1171_v50 }
 0x53d   : > { %1479 = vrot.lane.b32.xlu1 %v3632_v11, %s3332_s6 }
 0x53e   : > { %v2861_v53 = vmul.f32 -1.442695, %v1179_v52 }
 0x540   : > { %3221 = vpow2.f32 %v2861_v53 }
 0x541   : > { %1485 = vrot.lane.b32.xlu1 %v3632_v11, %s3321_s8  ;;  %s3334_s8 = smov 108  }
 0x545   : > { %1491 = vrot.lane.b32.xlu1 %v3632_v11, %s3333_s1  ;;  %s3335_s1 = smov 111  }
 0x54a   : > { %v3222_v54 = vpop.eup %3221 }
 0x54b   : > { %v1183_v55 = vadd.f32 1.0, %v3222_v54 }
 0x54d   : > { %3223 = vrcp.f32 %v1183_v55 }
 0x557   : > { %v3224_v56 = vpop.eup %3223 }
 0x558   : > { %v1186_v57 = vmul.f32 %v3224_v56, %v1179_v52 }
 0x5a7   : > { %v1384_v58 = vpop.permute.xlu1 %1383 }
 0x5a8   : > { %v1386_v59 = vsel %vm996_vm12, %v1186_v57, %v1384_v58 }
 0x5a9   : > { %2992 = vmatmul.mubr.msk.f32.vlgmr.msra.gmra.mrb[4].mxu1 %vm1397_vm7, %v1386_v59 }
 0x5ab   : > { %v1474_v60 = vpop.permute.xlu1 %1473 }
 0x5ac   : > { %v1476_v61 = vsel %vm996_vm12, %v1474_v60, 0.0 }
 0x5ad   : > { %1477 = vadd.xlane.f32.xlu0 %v1476_v61 }
 0x5af   : > { %v1480_v62 = vpop.permute.xlu1 %1479 }
 0x5b0   : > { %v1482_v63 = vsel %vm996_vm12, %v1480_v62, 0.0 }
 0x5b1   : > { %1483 = vadd.xlane.f32.xlu1 %v1482_v63 }
 0x5b3   : > { %v1486_v0 = vpop.permute.xlu1 %1485 }
 0x5b4   : > { %v1488_v4 = vsel %vm996_vm12, %v1486_v0, 0.0 }
 0x5b5   : > { %1489 = vadd.xlane.f32.xlu0 %v1488_v4 }
 0x5b7   : > { %v1492_v5 = vpop.permute.xlu1 %1491 }
 0x5b8   : > { %v1494_v11 = vsel %vm996_vm12, %v1492_v5, 0.0 }
 0x5b9   : > { %1495 = vadd.xlane.f32.xlu0 %v1494_v11 }
 0x5c2   : > { %1515 = vrot.lane.b32.xlu1 %v3628_v6, %s3334_s8  ;;  %v3338_v6 = vmov 2  }
 0x5c3   : > { %3214 = vset.pattern.permute.xlu1 %v3338_v6 }
 0x5cf   : > { %1507 = vperm.xlu0 %3212, %v1505_v13  }
 0x5d3   : > { %1518 = vrot.lane.b32.xlu0 %v3624_v2, %s3335_s1 }
 0x5d7   : > { %1521 = vrot.lane.b32.xlu0 %v3622_v1, %s3335_s1 }
 0x5db   : > { %1524 = vrot.lane.b32.xlu0 %v3624_v2, %s3336_s26  ;;  %v2868_v2 = vld [vmem:[%s3941_s12] ss:$0 sm:$0xff] }
 0x5df   : > { %1511 = vrot.lane.b32.xlu0 %v1379_v46, %s3337_s7 }
 0x63a   : > { %v1478_v14 = vpop.xlane.xlu0 %1477 }
 0x63e   : > { %v1484_v49 = vpop.xlane.xlu1 %1483 }
 0x63f   : > { %v1498_v20 = vsel %vm1497_vm9, %v1478_v14, %v1484_v49 }
 0x642   : > { %v1490_v15 = vpop.xlane.xlu0 %1489  ;;  %v1516_v30 = vpop.permute.xlu1 %1515 }
 0x643   : > { %v1500_v21 = vsel %vm1499_vm10, %v1498_v20, %v1490_v15 }
 0x646   : > { %v1496_v16 = vpop.xlane.xlu0 %1495 }
 0x647   : > { %v1501_v1 = vsel %vm1160_vm0, %v1500_v21, %v1496_v16  ;;  %vm1536_vm0 = vcmask 261120  }
 0x648   : > { %v1502_v24 = vmul.f32 0.35355338, %v1501_v1 }
 0x64e   : > { %v1508_v17 = vpop.permute.xlu0 %1507 }
 0x64f   : > { %vm1509_vm13 = vcmp.eq.s32.totalorder %v1508_v17, 1 }
 0x652   : > { %v1519_v18 = vpop.permute.xlu0 %1518 }
 0x656   : > { %v1522_v19 = vpop.permute.xlu0 %1521 }
 0x65a   : > { %v1525_v22 = vpop.permute.xlu0 %1524 }
 0x65e   : > { %v1512_v28 = vpop.permute.xlu0 %1511 }
 0x67c   : > { %v1467_v23 = vpop.f32.mrb[4].mxu1 }
 0x67d   : > { %v1468_v25 = vadd.f32 %v2868_v2, %v1467_v23  ;;  %v2993_v26 = vpop.f32.mrb[5].mxu1 }
 0x67f   : > { %v1503_v27 = vadd.f32 %v1502_v24, %v1468_v25 }
 0x681   : > { %v1510_v29 = vsel %vm1509_vm13, %v1503_v27, -1e+09 }
 0x682   : > { %v1528_v31 = vsel %vm1527_vm11, %v1510_v29, %v1512_v28  ;;  %1565 = vperm.xlu1 %3214, %v1510_v29   ;;  %1541 = vperm.xlu0 %3212, %v1510_v29  }
 0x683   : > { %v1529_v32 = vsel %vm1203_vm5, %v1528_v31, %v1516_v30  ;;  %vm1596_vm5 = vcmask 60416  }
 0x684   : > { %v1530_v33 = vsel %vm1215_vm6, %v1529_v32, %v1519_v18  ;;  %v1594_v18 = vld [vmem:[#allocation3] sm:$0xf] }
 0x685   : > { %v1532_v34 = vsel %vm1531_vm14, %v1530_v33, %v1522_v19 }
 0x686   : > { %v1534_v35 = vsel %vm1533_vm15, %v1532_v34, %v1525_v22  ;;  %3215 = vset.pattern.permute.xlu1 %v3339_v36  ;;  %3213 = vset.pattern.permute.xlu0 %v3340_v37 }
 0x687   : > { %1537 = vst.msk [vmem:[%s1535_s4] sm:$0xff] %vm1536_vm0, %v1534_v35  ;;  %1577 = vperm.xlu1 %3215, %v1510_v29   ;;  %1553 = vperm.xlu0 %3213, %v1510_v29  }
 0x68b   : > { %3216 = vset.pattern.permute.xlu0 %v3339_v36 }
 0x701   : > { %v1566_v38 = vpop.permute.xlu1 %1565  ;;  %v1542_v39 = vpop.permute.xlu0 %1541 }
 0x702   : > { %v1568_v40 = vsel %vm1538_vm2, %v1566_v38, -1e+30  ;;  %v1544_v41 = vsel %vm1538_vm2, %v1542_v39, -1e+30 }
 0x703   : > { %v1569_v42 = vsel %vm996_vm12, %v1568_v40, -inf  ;;  %v1545_v43 = vsel %vm996_vm12, %v1544_v41, -inf }
 0x704   : > { %v1570_v44 = vrot.slane %v1569_v42, 4  ;;  %v1546_v45 = vrot.slane %v1545_v43, 4 }
 0x706   : > { %v1571_v46 = vmax.f32 %v1569_v42, %v1570_v44  ;;  %v1547_v47 = vmax.f32 %v1545_v43, %v1546_v45  ;;  %v1578_v48 = vpop.permute.xlu1 %1577  ;;  %v1554_v50 = vpop.permute.xlu0 %1553 }
 0x707   : > { %v1580_v51 = vsel %vm1538_vm2, %v1578_v48, -1e+30  ;;  %v1556_v52 = vsel %vm1538_vm2, %v1554_v50, -1e+30 }
 0x708   : > { %v1572_v53 = vrot.slane %v1571_v46, 2  ;;  %v1548_v54 = vrot.slane %v1547_v47, 2  ;;  %v1581_v55 = vsel %vm996_vm12, %v1580_v51, -inf  ;;  %v1557_v56 = vsel %vm996_vm12, %v1556_v52, -inf }
 0x709   : > { %v1582_v57 = vrot.slane %v1581_v55, 4  ;;  %v1558_v58 = vrot.slane %v1557_v56, 4  ;;  %vm1592_vm12 = vcmask 1042432  }
 0x70a   : > { %v1549_v59 = vmax.f32 %v1547_v47, %v1548_v54  ;;  %v1573_v62 = vmax.f32 %v1571_v46, %v1572_v53 }
 0x70b   : > { %v1583_v60 = vmax.f32 %v1581_v55, %v1582_v57  ;;  %v1559_v61 = vmax.f32 %v1557_v56, %v1558_v58 }
 0x70c   : > { %v1550_v4 = vrot.slane %v1549_v59, 1  ;;  %v1574_v12 = vrot.slane %v1573_v62, 1 }
 0x70d   : > { %v1584_v63 = vrot.slane %v1583_v60, 2  ;;  %v1560_v0 = vrot.slane %v1559_v61, 2 }
 0x70e   : > { %v1551_v14 = vmax.f32 %v1549_v59, %v1550_v4  ;;  %v1575_v16 = vmax.f32 %v1573_v62, %v1574_v12 }
 0x70f   : > { %v1585_v5 = vmax.f32 %v1583_v60, %v1584_v63  ;;  %v1561_v11 = vmax.f32 %v1559_v61, %v1560_v0 }
 0x711   : > { %v1586_v13 = vrot.slane %v1585_v5, 1  ;;  %v1562_v6 = vrot.slane %v1561_v11, 1 }
 0x713   : > { %v1563_v15 = vmax.f32 %v1561_v11, %v1562_v6  ;;  %v1587_v17 = vmax.f32 %v1585_v5, %v1586_v13 }
 0x715   : > { %v1589_v49 = vsel %vm1588_vm3, %v1551_v14, %v1563_v15 }
 0x716   : > { %v1591_v19 = vsel %vm1590_vm4, %v1589_v49, %v1575_v16 }
 0x717   : > { %v1593_v20 = vsel %vm1592_vm12, %v1591_v19, %v1587_v17 }
 0x718   : > { %v1595_v21 = vmax.f32 %v1594_v18, %v1593_v20 }
 0x71a   : > { %1597 = vst.msk [vmem:[#allocation3] sm:$0xf] %vm1596_vm5, %v1595_v21 }
 0x71b PF: > { %p2870_p10 = scmp.ne.s32.totalorder %s3300_s3, 1 }
 0x71c   : > { %vm1605_vm6 = vcmask (!%p2870_p10), 64512   ;;  %v3341_v2 = vmov (!%p2870_p10), 0.0   ;;  %vm3342_vm7 = vmmov (!%p2870_p10), 0   ;;  %v3343_v22 = vmov (!%p2870_p10), 1.0   ;;  %s1602_s29 = scalar_lea.vmem (!%p2870_p10), [#allocation6], %s3542_s9 }
 0x71d   : > { %1601 = sbr.rel (%p2870_p10) target bundleno = 2402 (0x962), region = 136  ;;  %2994 = vmatprep.subr.mxu0 (!%p2870_p10), %v3341_v2  ;;  %2996 = vmatprep.mubr.msk.f32.mxu0 (!%p2870_p10), %vm3342_vm7, %v3341_v2  ;;  %v1603_v23 = vld [vmem:[%s1602_s29] sm:$0xff] (!%p2870_p10)  ;;  %v1686_v31 = vld [vmem:[#allocation4] sm:$0xf] (!%p2870_p10)  ;;  %vm1793_vm8 = vcmask (!%p2870_p10), 60416  }
 0x71e   : > { %2999 = vmatprep.subr.mxu1 (!%p2870_p10), %v3341_v2  ;;  %3001 = vmatprep.mubr.msk.f32.mxu1 (!%p2870_p10), %vm3342_vm7, %v3341_v2 }
 0x71f   : > { %3000 = vmatpush3.msk.msra.mxu1 (!%p2870_p10), %vm828_vm1, %v3343_v22 }
 0x721   : > { %v1604_v1 = vld [vmem:[#allocation3] sm:$0xf] (!%p2870_p10) }
 0x722   : > { %2995 = vmatpush3.xpose.msk.msra.mxu0 (!%p2870_p10), %vm1605_vm6, %v1604_v1 }
 0x725   : > { %2997 = vmatmul.mubr.msk.f32.vlgmr.msra.gmra.mrb[0].mxu0 %vm1605_vm6, %v3580_v10 }
 0x7f8   : > { %v1678_v24 = vpop.f32.mrb[0].mxu0 }
 0x7f9   : > { %v1682_v25 = vsub.f32 %v1603_v23, %v1678_v24  ;;  %v2998_v26 = vpop.f32.mrb[1].mxu0 }
 0x7fb   : > { %v1683_v27 = vmul.f32 1.442695, %v1682_v25 }
 0x7fd   : > { %3225 = vpow2.f32 %v1683_v27 }
 0x807   : > { %v3226_v28 = vpop.eup %3225 }
 0x808   : > { %v1685_v29 = vmul.f32 %v3226_v28, %v3566_v7 }
 0x80a   : > { %1687 = vxpose.xlu0.b32.start.end [1/1] (short) (narrow) %v1685_v29, 8 }
 0x88a   : > { %v1703_v30 = vpop.trf.xlu0 }
 0x88b   : > { %3002 = vmatmul.mubr.msk.f32.vlgmr.msra.gmra.mrb[0].mxu1 %vm1605_vm6, %v1703_v30 }
 0x95e   : > { %v1788_v32 = vpop.f32.mrb[0].mxu1 }
 0x95f   : > { %v1792_v33 = vadd.f32 %v1788_v32, %v1686_v31  ;;  %v3003_v9 = vpop.f32.mrb[1].mxu1 }
 0x961   : > { %1794 = vst.msk [vmem:[#allocation4] sm:$0xf] %vm1793_vm8, %v1792_v33 }
 0x962 PF: > { %p2875_p11 = scmp.ne.s32.totalorder %s3300_s3, 2 }
 0x963   : > { %v1808_v34 = vld [vmem:[#allocation3] sm:$0xf] (!%p2875_p11)  ;;  %vm1809_vm1 = vcmask (!%p2875_p11), 64512   ;;  %v3344_v36 = vmov (!%p2875_p11), 0.0   ;;  %vm3345_vm9 = vmmov (!%p2875_p11), 0   ;;  %s1806_s3 = scalar_lea.vmem (!%p2875_p11), [#allocation6], %s3542_s9 }
 0x964   : > { %1798 = sbr.rel (%p2875_p11) target bundleno = 4762 (0x129a), region = 140  ;;  %3004 = vmatprep.subr.mxu0 (!%p2875_p11), %v3344_v36  ;;  %3009 = vmatprep.subr.mxu1 (!%p2875_p11), %v3344_v36  ;;  %v3748_v37 = vld [vmem:[%s1806_s3] sm:$0xff] (!%p2875_p11)  ;;  %s3346_s0 = smov (!%p2875_p11), 125   ;;  %vm1966_vm10 = vcmask (!%p2875_p11), 31744   ;;  %v1991_v52 = vld [vmem:[%s3946_s17 + $0x8] sm:$0xff] (!%p2875_p11)  ;;  %v3348_v54 = vmov (!%p2875_p11), 0.0|0.0  }
 0x965   : > { %3005 = vmatpush3.xpose.msk.msra.mxu0 (!%p2875_p11), %vm1809_vm1, %v1808_v34  ;;  %3006 = vmatprep.mubr.msk.f32.mxu0 (!%p2875_p11), %vm3345_vm9, %v3344_v36  ;;  %s3347_s5 = smov (!%p2875_p11), 122   ;;  %v1990_v51 = vld [vmem:[%s3946_s17] sm:$0xff] (!%p2875_p11)  ;;  %v1992_v55 = vld [vmem:[%s3946_s17 + $0x10] sm:$0xff] (!%p2875_p11)  ;;  %v1993_v56 = vld [vmem:[%s3946_s17 + $0x18] sm:$0x3] (!%p2875_p11)  ;;  %vm2005_vm11 = vcmask (!%p2875_p11), 1041408  }
 0x966   : > { %3011 = vmatprep.mubr.msk.f32.mxu1 (!%p2875_p11), %vm3345_vm9, %v3344_v36  ;;  %1976 = vrot.lane.b32.xlu1 (!%p2875_p11), %v3748_v37, %s3346_s0  ;;  %v3081_v53 = vpack.c.bf16 (!%p2875_p11), %v1991_v52, %v1990_v51  ;;  %v3084_v57 = vpack.c.bf16 (!%p2875_p11), %v1993_v56, %v1992_v55  ;;  %vm3349_vm13 = vmmov (!%p2875_p11), 1   ;;  %s3350_s2 = smov (!%p2875_p11), 124   ;;  %vm1982_vm15 = vcmask (!%p2875_p11), 130048   ;;  %v2086_v11 = vld [vmem:[%s3948_s19] sm:$0xff] (!%p2875_p11)  ;;  %v2087_v12 = vld [vmem:[%s3948_s19 + $0x8] sm:$0xff] (!%p2875_p11)  ;;  %v2259_v28 = vld [vmem:[%s3952_s23 + $0x10] sm:$0xff] (!%p2875_p11) }
 0x967   : > { %3080 = vmatprep.subr.bf16.mxu0 (!%p2875_p11), %v3348_v54  ;;  %vm3085_vm14 = vmpackc.low (!%p2875_p11), %vm2005_vm11, %vm3349_vm13  ;;  %vm1984_vm0 = vcmask (!%p2875_p11), 138240   ;;  %vm1986_vm2 = vcmask (!%p2875_p11), 162816   ;;  %vm1988_vm3 = vcmask (!%p2875_p11), 187392   ;;  %vm2001_vm4 = vcmask (!%p2875_p11), 211968   ;;  %v2881_v6 = vld [vmem:[%s3947_s18] ss:$0 sm:$0xff] (!%p2875_p11) }
 0x968   : > { %v1886_v35 = vld [vmem:[#allocation4] sm:$0xf] (!%p2875_p11)  ;;  %3007 = vmatmul.mubr.msk.f32.vlgmr.msra.gmra.mrb[0].mxu0 (!%p2875_p11), %vm1809_vm1, %v3580_v10  ;;  %v3088_v13 = vpack.c.bf16 (!%p2875_p11), %v2087_v12, %v2086_v11  ;;  %v2168_v21 = vld [vmem:[%s3950_s21] sm:$0xff] (!%p2875_p11)  ;;  %v2260_v30 = vld [vmem:[%s3952_s23 + $0x18] sm:$0xff] (!%p2875_p11)  ;;  %s3352_s7 = smov (!%p2875_p11), 108   ;;  %vm2271_vm12 = vcmask (!%p2875_p11), 261120  }
 0x969   : > { %3010 = vmatpush3.xpose.msk.msra.mxu1 (!%p2875_p11), %vm1809_vm1, %v1886_v35  ;;  %3022 = vmatprep.mubr.msk.f32.mxu0 (!%p2875_p11), %vm3345_vm9, %v3344_v36  ;;  %v2169_v1 = vld [vmem:[%s3950_s21 + $0x8] sm:$0xff] (!%p2875_p11)  ;;  %v2885_v22 = vld [vmem:[%s3949_s20] ss:$0 sm:$0xff] (!%p2875_p11)  ;;  %v3097_v31 = vpack.c.bf16 (!%p2875_p11), %v2260_v30, %v2259_v28  ;;  %s2893_s25 = sadd.s32 (!%p2875_p11), 4294967295, %s3542_s9  ;;  %vm2372_vm5 = vcmp.eq.s32.totalorder (!%p2875_p11), %v3546_v3, 0  ;;  %s3354_s29 = smov (!%p2875_p11), 1  }
 0x96a   : > { %1979 = vrot.lane.b32.xlu1 (!%p2875_p11), %v3748_v37, %s3347_s5  ;;  %3087 = vmatprep.subr.bf16.mxu1 (!%p2875_p11), %v3348_v54  ;;  %v3091_v2 = vpack.c.bf16 (!%p2875_p11), %v2169_v1, %v2168_v21  ;;  %v2257_v26 = vld [vmem:[%s3952_s23] sm:$0xff] (!%p2875_p11)  ;;  %v2258_v27 = vld [vmem:[%s3952_s23 + $0x8] sm:$0xff] (!%p2875_p11)  ;;  %s3355_s3 = smov (!%p2875_p11), 127   ;;  %s3356_s5 = smov (!%p2875_p11), 126   ;;  %vm2422_vm7 = vcmask (!%p2875_p11), 7168   ;;  %vm2424_vm8 = vcmask (!%p2875_p11), 15360  }
 0x96b   : > { %3082 = vmatpush3.bf16.msra.mxu0 %v3081_v53  ;;  %v3094_v29 = vpack.c.bf16 %v2258_v27, %v2257_v26  ;;  %v2887_v32 = vld [vmem:[%s3951_s22] ss:$0 sm:$0xff]  ;;  %s4010_s25 = smov (%p839_p7, %s2893_s25), 15  ;;  %s3357_s8 = smov 64  }
 0x96c   : > { %3012 = vmatmul.mubr.msk.f32.vlgmr.msra.gmra.mrb[0].mxu1 %vm1809_vm1, %v3580_v10  ;;  %3083 = vmatprep.subr.bf16.mxu0 %v3348_v54  ;;  %s2366_s4 = scalar_lea.vmem [#allocation6], %s4010_s25  ;;  %v2439_v52 = vld [vmem:[#allocation2] sm:$0xff]  ;;  %s3358_s9 = smov 2  }
 0x96d   : > { %3029 = vmatprep.mubr.msk.f32.mxu1 %vm3345_vm9, %v3344_v36  ;;  %3089 = vmatpush3.bf16.msra.mxu1 %v3088_v13  ;;  %v2890_v53 = vld [vmem:[%s3953_s24] ss:$0 sm:$0xff]  ;;  %s3362_s6 = smov 110   ;;  %s3991_s26 = sld [smem:[#allocation26_spill]] }
 0x96e   : > { %3090 = vmatprep.subr.bf16.mxu1 %v3348_v54  ;;  %p2897_p12 = scmp.ne.s32.totalorder %s3296_s27, 1 }
 0x96f   : > { %3086 = vmatpush3.bf16.msk.msra.mxu0 %vm3085_vm14, %v3084_v57  ;;  %vm3366_vm11 = vmmov (!%p2897_p12), 0   ;;  %s3368_s27 = smov (!%p2897_p12), 104   ;;  %vm2752_vm13 = vcmask (!%p2897_p12), 89088  }
 0x970   : > { %3093 = vmatprep.subr.bf16.mxu0 %v3348_v54 }
 0x9d8   : > { %v1977_v58 = vpop.permute.xlu1 %1976 }
 0x9dc   : > { %v1980_v62 = vpop.permute.xlu1 %1979 }
 0xa3b   : > { %v1882_v38 = vpop.f32.mrb[0].mxu0 }
 0xa3c   : > { %v1887_v40 = vsub.f32 %v3748_v37, %v1882_v38  ;;  %v3008_v41 = vpop.f32.mrb[1].mxu0 }
 0xa3d   : > { %v3351_v41 = vmov 0  }
 0xa3e   : > { %v1888_v44 = vmul.f32 1.442695, %v1887_v40  ;;  %v1799_v40 = vld [vmem:[%s3559_s28] sm:$0xff]  ;;  %3227 = vset.pattern.permute.xlu0 %v3351_v41  ;;  %s3353_s28 = smov 20  }
 0xa3f   : > { %v1959_v39 = vpop.f32.mrb[0].mxu1 }
 0xa40   : > { %v1960_v42 = vadd.f32 1e-08, %v1959_v39  ;;  %v3013_v43 = vpop.f32.mrb[1].mxu1 }
 0xa42   : > { %3232 = vrcp.f32 %v1960_v42 }
 0xa43   : > { %3234 = vpow2.f32 %v1888_v44 }
 0xa4c   : > { %v3233_v45 = vpop.eup %3232 }
 0xa4d   : > { %v3235_v46 = vpop.eup %3234 }
 0xa4e   : > { %v1964_v47 = vmul.f32 %v3235_v46, %v3233_v45 }
 0xa50   : > { %v3755_v48 = vmul.f32 %v3566_v7, %v1964_v47  ;;  %v2894_v47 = vld [vmem:[%s2366_s4] ss:$0 sm:$0xff]  ;;  %s3992_s4 = sld [smem:[#allocation22_spill]] (!%p2897_p12) }
 0xa52   : > { %v1967_v50 = vsel %vm1966_vm10, %v3755_v48, 0.0 }
 0xa53   : > { %1968 = vadd.xlane.f32.xlu0 %v1967_v50 }
 0xa69   : > { %1973 = vrot.lane.b32.xlu0 %v3748_v37, %s3350_s2 }
 0xa6d   : > { %1801 = vperm.xlu0 %3227, %v1799_v40  }
 0xae0   : > { %v1969_v59 = vpop.xlane.xlu0 %1968 }
 0xae1   : > { %v1971_v60 = vmul.f32 0.25, %v1969_v59 }
 0xae4   : > { %v1974_v61 = vpop.permute.xlu0 %1973 }
 0xae5   : > { %v1983_v63 = vsel %vm1982_vm15, %v1974_v61, %v1971_v60 }
 0xae6   : > { %v1985_v0 = vsel %vm1984_vm0, %v1983_v63, %v1977_v58 }
 0xae7   : > { %v1987_v4 = vsel %vm1986_vm2, %v1985_v0, %v1980_v62 }
 0xae8   : > { %v1989_v5 = vsel %vm1988_vm3, %v1987_v4, %v1980_v62 }
 0xae9   : > { %3023 = vmatmul.mubr.msk.f32.vlgmr.msra.gmra.mrb[2].mxu0 %vm2001_vm4, %v1989_v5 }
 0xaea   : > { %3047 = vmatprep.mubr.msk.f32.mxu0 %vm3345_vm9, %v3344_v36  ;;  %3095 = vmatpush3.bf16.msra.mxu0 %v3094_v29 }
 0xaeb   : > { %3096 = vmatprep.subr.bf16.mxu0 %v3348_v54 }
 0xaec   : > { %v1802_v58 = vpop.permute.xlu0 %1801 }
 0xaed   : > { %vm1803_vm6 = vcmp.eq.s32.totalorder %v3571_v8, %v1802_v58  ;;  %v2357_v8 = vmul.f32 0.1, %v3748_v37  ;;  %v3367_v58 = vmov (!%p2897_p12), 0.0  }
 0xaee   : > { %3098 = vmatpush3.bf16.msra.mxu0 %v3097_v31  ;;  %v2876_v61 = vsel %vm1803_vm6, 1.0, %v3344_v36 }
 0xbbc   : > { %v2075_v14 = vpop.f32.mrb[2].mxu0 }
 0xbbd   : > { %v2076_v15 = vadd.f32 %v2881_v6, %v2075_v14  ;;  %v3024_v16 = vpop.f32.mrb[3].mxu0  ;;  %v3360_v14 = vmov 3  }
 0xbbe   : > { %3230 = vset.pattern.permute.xlu1 %v3360_v14  ;;  %v3361_v16 = vmov 1  }
 0xbbf   : > { %v2884_v17 = vmul.f32 -1.442695, %v2076_v15 }
 0xbc1   : > { %3236 = vpow2.f32 %v2884_v17  ;;  %v3363_v17 = vmov 2  }
 0xbcb   : > { %v3237_v18 = vpop.eup %3236 }
 0xbcc   : > { %v2082_v49 = vadd.f32 1.0, %v3237_v18 }
 0xbce   : > { %3238 = vrcp.f32 %v2082_v49  ;;  %v2892_v49 = vld [vmem:[%s3991_s26] ss:$0 sm:$0xff] }
 0xbd8   : > { %v3239_v19 = vpop.eup %3238 }
 0xbd9   : > { %v2085_v20 = vmul.f32 %v3239_v19, %v2076_v15 }
 0xbdb   : > { %3030 = vmatmul.mubr.msk.f32.vlgmr.msra.gmra.mrb[2].mxu1 %vm1982_vm15, %v2085_v20 }
 0xbdc   : > { %3036 = vmatprep.mubr.msk.f32.mxu1 %vm3345_vm9, %v3344_v36  ;;  %3092 = vmatpush3.bf16.msra.mxu1 %v3091_v2 }
 0xbdd   : > { %3050 = vmatprep.subr.mxu1 %v3344_v36 }
 0xcae   : > { %v2164_v23 = vpop.f32.mrb[2].mxu1 }
 0xcaf   : > { %v2165_v24 = vadd.f32 %v2885_v22, %v2164_v23  ;;  %v3031_v25 = vpop.f32.mrb[3].mxu1 }
 0xcb1   : > { %3037 = vmatmul.mubr.msk.f32.vlgmr.msra.gmra.mrb[4].mxu1 %vm1982_vm15, %v2165_v24 }
 0xcb2   : > { %3052 = vmatprep.mubr.msk.f32.mxu1 %vm3345_vm9, %v3344_v36 }
 0xd84   : > { %v2246_v33 = vpop.f32.mrb[4].mxu1 }
 0xd85   : > { %v2247_v9 = vadd.f32 %v2887_v32, %v2246_v33  ;;  %v3038_v34 = vpop.f32.mrb[5].mxu1 }
 0xd87   : > { %v2889_v35 = vmul.f32 -1.442695, %v2247_v9 }
 0xd89   : > { %3240 = vpow2.f32 %v2889_v35 }
 0xd93   : > { %v3241_v38 = vpop.eup %3240 }
 0xd94   : > { %v2253_v39 = vadd.f32 1.0, %v3241_v38 }
 0xd96   : > { %3242 = vrcp.f32 %v2253_v39 }
 0xda0   : > { %v3823_v42 = vpop.eup %3242 }
 0xda1   : > { %v2256_v43 = vmul.f32 %v3823_v42, %v2247_v9 }
 0xda3   : > { %2269 = vrot.lane.b32.xlu1 %v2256_v43, %s3350_s2 }
 0xda7   : > { %2368 = vrot.lane.b32.xlu1 %v3748_v37, %s3352_s7  ;;  %s3364_s7 = smov 12  }
 0xe15   : > { %v2270_v44 = vpop.permute.xlu1 %2269 }
 0xe16   : > { %3048 = vmatmul.mubr.msk.f32.vlgmr.msra.gmra.mrb[4].mxu0 %vm2271_vm12, %v2270_v44 }
 0xe17   : > { %3068 = vmatprep.mubr.msk.f32.mxu0 (!%p2897_p12), %vm3366_vm11, %v3367_v58 }
 0xe19   : > { %v2369_v45 = vpop.permute.xlu1 %2368 }
 0xe1a   : > { %v2371_v46 = vrot.slane %v2369_v45, 7 }
 0xe1c   : > { %2380 = vrot.lane.b32.xlu1 %v2371_v46, %s3353_s28 }
 0xe8e   : > { %v2381_v50 = vpop.permute.xlu1 %2380 }
 0xe8f   : > { %v2383_v51 = vsel %vm2372_vm5, %v2894_v47, %v2381_v50  ;;  %v2548_v50 = vld [vmem:[#allocation5] sm:$0xff] }
 0xe90   : > { %2389 = vrot.lane.b32.xlu1 %v2383_v51, %s3354_s29  ;;  %2385 = vrot.lane.b32.xlu0 %v2383_v51, %s3355_s3 }
 0xe94   : > { %2402 = vrot.lane.b32.xlu1 %v2383_v51, %s3356_s5 }
 0xe98   : > { %2441 = vrot.lane.b32.xlu1 %v2439_v52, %s3357_s8 }
 0xee9   : > { %v2340_v54 = vpop.f32.mrb[4].mxu0 }
 0xeea   : > { %v2341_v55 = vadd.f32 %v2890_v53, %v2340_v54  ;;  %v3049_v56 = vpop.f32.mrb[5].mxu0  ;;  %v2662_v54 = vld [vmem:[%s3992_s4] sm:$0xff] (!%p2897_p12) }
 0xeeb   : > { %v3365_v56 = vmov (!%p2897_p12), 0.0|0.0  }
 0xeec   : > { %2427 = vrot.lane.b32.xlu1 %v2341_v55, %s3350_s2  ;;  %s3359_s2 = smov 107   ;;  %v2344_v18 = vmul.f32 %v3823_v42, %v2341_v55  ;;  %v2664_v55 = vld [vmem:[%s3992_s4 + $0x10] sm:$0xff] (!%p2897_p12)  ;;  %3099 = vmatprep.subr.bf16.mxu0 (!%p2897_p12), %v3365_v56 }
 0xeee   : > { %v2352_v19 = vmul.f32 %v2892_v49, %v2344_v18 }
 0xef0   : > { %2398 = vrot.lane.b32.xlu1 %v2383_v51, %s3358_s9  ;;  %v2353_v20 = vsel %vm1966_vm10, %v2352_v19, 0.0 }
 0xf02   : > { %v2390_v3 = vpop.permute.xlu1 %2389  ;;  %v2386_v4 = vpop.permute.xlu0 %2385 }
 0xf03   : > { %v2392_v57 = vmul.f32 %v2390_v3, %v3748_v37  ;;  %v2388_v5 = vmul.f32 %v2386_v4, %v3748_v37 }
 0xf05   : > { %2394 = vrot.lane.b32.xlu0 %v2392_v57, %s3355_s3  ;;  %v2665_v57 = vld [vmem:[%s3992_s4 + $0x18] sm:$0xff] (!%p2897_p12) }
 0xf06   : > { %v2403_v59 = vpop.permute.xlu1 %2402 }
 0xf07   : > { %v2405_v60 = vmul.f32 %v2403_v59, %v3748_v37 }
 0xf09   : > { %2407 = vrot.lane.b32.xlu1 %v2405_v60, %s3358_s9 }
 0xf0a   : > { %v2442_v62 = vpop.permute.xlu1 %2441 }
 0xf0b   : > { %3051 = vmatpush3.msra.mxu1 %v2442_v62 }
 0xf0c   : > { %3053 = vmatmul.mubr.msk.f32.vlgmr.msra.gmra.mrb[6].mxu1 %vm1809_vm1, %v2876_v61  ;;  %3055 = vmatprep.subr.mxu1 %v3344_v36  ;;  %v3103_v61 = vpack.c.bf16 (!%p2897_p12), %v2665_v57, %v2664_v55 }
 0xf0d   : > { %3057 = vmatprep.mubr.msk.f32.mxu1 %vm3345_vm9, %v3344_v36  ;;  %vm2540_vm9 = vcmask 195584  }
 0xf5e   : > { %v2428_v63 = vpop.permute.xlu1 %2427 }
 0xf5f   : > { %v2430_v0 = vsel %vm1966_vm10, %v2428_v63, 0.0  ;;  %vm2655_vm10 = vcmask 285696  }
 0xf60   : > { %2431 = vadd.xlane.f32.xlu0 %v2430_v0 }
 0xf62   : > { %v2399_v11 = vpop.permute.xlu1 %2398 }
 0xf63   : > { %v2401_v6 = vmul.f32 %v2399_v11, %v3748_v37 }
 0xf76   : > { %2359 = vrot.lane.b32.xlu0 %v2357_v8, %s3346_s0 }
 0xf77   : > { %v2395_v12 = vpop.permute.xlu0 %2394 }
 0xf78   : > { %v2397_v13 = vsub.f32 %v2388_v5, %v2395_v12 }
 0xf7a   : > { %2519 = vperm.xlu0 %3227, %v3755_v48   ;;  %2412 = vrot.lane.b32.xlu1 %v2397_v13, %s3359_s2 }
 0xf7b   : > { %v2408_v36 = vpop.permute.xlu1 %2407 }
 0xf7c   : > { %v2410_v15 = vsub.f32 %v2401_v6, %v2408_v36 }
 0xf7e   : > { %3228 = vset.pattern.permute.xlu0 %v3361_v16  ;;  %2416 = vrot.lane.b32.xlu1 %v2410_v15, %s3359_s2 }
 0xf7f   : > { %2524 = vperm.xlu0 %3228, %v3755_v48  }
 0xf82   : > { %2419 = vrot.lane.b32.xlu1 %v2397_v13, %s3362_s6  ;;  %s3993_s6 = sld [smem:[#allocation23_spill]] (!%p2897_p12) }
 0xf83   : > { %3229 = vset.pattern.permute.xlu0 %v3363_v17 }
 0xf84   : > { %2529 = vperm.xlu0 %3229, %v3755_v48  }
 0xf88   : > { %v2898_v62 = vld [vmem:[%s3993_s6] ss:$0 sm:$0xff] (!%p2897_p12) }
 0xfa2   : > { %2549 = vxpose.xlu0.b32.start.end [1/1] (short) (narrow) %v3580_v10, 8  ;;  %v2356_v10 = vmul.f32 0.9, %v3748_v37 }
 0xfa6   : > { %2354 = vadd.xlane.f32.xlu1 %v2353_v20 }
 0xfcb   : > { %3231 = vset.pattern.permute.xlu0 %v3360_v14 }
 0xfdf   : > { %v2513_v21 = vpop.f32.mrb[6].mxu1 }
 0xfe0   : > { %v3054_v1 = vpop.f32.mrb[7].mxu1 }
 0xfec   : > { %v2413_v2 = vpop.permute.xlu1 %2412 }
 0xfed   : > { %v2432_v25 = vpop.xlane.xlu0 %2431 }
 0xff0   : > { %v2417_v22 = vpop.permute.xlu1 %2416 }
 0xff1   : > { %v2423_v23 = vsel %vm2422_vm7, %v2413_v2, %v2417_v22  ;;  %v2360_v28 = vpop.permute.xlu0 %2359 }
 0xff2   : > { %v2362_v29 = vadd.f32 %v2360_v28, %v2356_v10 }
 0xff4   : > { %v2420_v24 = vpop.permute.xlu1 %2419 }
 0xff5   : > { %v2425_v26 = vsel %vm2424_vm8, %v2423_v23, %v2420_v24 }
 0xff6   : > { %v2433_v27 = vmul.f32 %v2432_v25, %v2425_v26 }
 0xff8   : > { %2435 = vrot.lane.b32.xlu1 %v2433_v27, %s3353_s28 }
 0xff9   : > { %v2520_v9 = vpop.permute.xlu0 %2519 }
 0xffa   : > { %v2522_v41 = vmul.f32 %v2520_v9, %v2513_v21 }
 0xffc   : > { %2534 = vperm.xlu1 %3230, %v3755_v48  }
 0xffe   : > { %v2525_v34 = vpop.permute.xlu0 %2524 }
 0xfff   : > { %v2527_v39 = vmul.f32 %v2525_v34, %v2513_v21 }
0x1001   : > { %v2538_v48 = vsel %vm1809_vm1, %v2522_v41, %v2527_v39 }
0x1003   : > { %v2530_v35 = vpop.permute.xlu0 %2529 }
0x1004   : > { %v2532_v40 = vmul.f32 %v2530_v35, %v2513_v21 }
0x1006   : > { %v2539_v37 = vsel %vm1982_vm15, %v2538_v48, %v2532_v40 }
0x1022   : > { %v2565_v47 = vpop.trf.xlu0 }
0x1033   : > { %v2355_v30 = vpop.xlane.xlu1 %2354 }
0x1034   : > { %v2363_v31 = vmul.f32 %v2362_v29, %v2355_v30 }
0x106a   : > { %v2436_v32 = vpop.permute.xlu1 %2435 }
0x106b   : > { %v2438_v33 = vadd.f32 %v2436_v32, %v2363_v31 }
0x106d   : > { %2543 = vrot.lane.b32.xlu1 %v2438_v33, %s3364_s7 }
0x107b   : > { %v2535_v38 = vpop.permute.xlu1 %2534 }
0x107c   : > { %v2537_v42 = vmul.f32 %v2535_v38, %v2513_v21 }
0x107e   : > { %v2541_v44 = vsel %vm2540_vm9, %v2539_v37, %v2537_v42 }
0x10df   : > { %v2544_v43 = vpop.permute.xlu1 %2543 }
0x10e0   : > { %v2546_v45 = vsel %vm2271_vm12, %v2541_v44, %v2544_v43 }
0x10e1   : > { %v2547_v46 = vmul.f32 %v3566_v7, %v2546_v45  ;;  %v2663_v7 = vld [vmem:[%s3992_s4 + $0x8] sm:$0xff] (!%p2897_p12) }
0x10e2   : > { %v3100_v3 = vpack.c.bf16 (!%p2897_p12), %v2663_v7, %v2662_v54 }
0x10e3   : > { %3056 = vmatpush3.msra.mxu1 %v2547_v46 }
0x10e4   : > { %3058 = vmatmul.mubr.msk.f32.vlgmr.msra.gmra.mrb[8].mxu1 %vm1809_vm1, %v2565_v47  ;;  %3101 = vmatpush3.bf16.msra.mxu0 (!%p2897_p12), %v3100_v3 }
0x10e5   : > { %3102 = vmatprep.subr.bf16.mxu0 (!%p2897_p12), %v3365_v56 }
0x10e8   : > { %3104 = vmatpush3.bf16.msra.mxu0 (!%p2897_p12), %v3103_v61 }
0x11b4   : > { %2660 = sbr.rel (%p2897_p12) target bundleno = 4762 (0x129a), region = 144 }
0x11b7   : > { %v2650_v51 = vpop.f32.mrb[8].mxu1 }
0x11b8   : > { %v2654_v52 = vadd.f32 %v2650_v51, %v2548_v50  ;;  %v3059_v53 = vpop.f32.mrb[9].mxu1 }
0x11ba   : > { %2656 = vst.msk [vmem:[#allocation5] sm:$0xff] %vm2655_vm10, %v2654_v52 }
0x11c1   : > { %v2661_v59 = vld [vmem:[#allocation5] sm:$0xff] }
0x11c2   : > { %v2746_v60 = vmul.f32 0.14285715, %v2661_v59  ;;  %3069 = vmatmul.mubr.msk.f32.vlgmr.msra.gmra.mrb[0].mxu0 %vm2271_vm12, %v2661_v59 }
0x11c4   : > { %2748 = vrot.lane.b32.xlu0 %v2746_v60, %s3368_s27 }
0x1236   : > { %v2749_v0 = vpop.permute.xlu0 %2748 }
0x1295   : > { %v2742_v63 = vpop.f32.mrb[0].mxu0 }
0x1296   : > { %v2743_v8 = vadd.f32 %v2898_v62, %v2742_v63  ;;  %v3070_v4 = vpop.f32.mrb[1].mxu0 }
0x1298   : > { %v2751_v5 = vsel %vm1809_vm1, %v2743_v8, %v2749_v0 }
0x1299   : > { %2753 = vst.msk [vmem:[#allocation7] sm:$0xff] %vm2752_vm13, %v2751_v5 }
0x129a PF: > { %s3994_s0 = sld [smem:[#allocation12_spill]]  ;;  %s3369_s7 = smov [#allocation7]  }
0x129b   : > { %s2761_s28 = sshll.u32 %s3369_s7, 4  ;;  %s2762_s28 = int_to_ptr.vmem [resolvable:$true] %s2761_s28 }
0x129c   : > { %s3244_s25 = scalar_lea.vmem %s2762_s28, 128  ;;  %p3251_p3 = scmp.lt.s32.totalorder %s2762_s28, %s2762_s28 }
0x129d   : > { %p3245_p0 = scmp.ne.s32.totalorder %s2762_s28, %s3244_s25  ;;  %p3252_p4 = scmp.lt.s32.totalorder %s3244_s25, %s3244_s25 }
0x129f   : > { %p3253_p5 = por %p3252_p4, %p3251_p3 }
0x12a0   : > { %s3995_s1 = sadd.s32 4294967295, %s3994_s0  }
0x12a1   : > { %p3888_p13 = scmp.eq.s32.totalorder %s3995_s1, 5 }
0x12a3   : > { %p3246_p1 = pnand %p3245_p0, %p3888_p13 }
0x12a5   : > { %p3247_p2 = pneg %p3246_p1 }
0x12a7   : > { %p3254_p6 = pnand %p3253_p5, %p3247_p2 }
0x12a9   : > { %3257 = shalt.err (!%p3254_p6)
}
0x12aa   : > { %s3997_s5 = sld [smem:[#allocation27_spill]] }
0x12b0   : > { %s3258_s8 = scalar_lea.hbm %s3997_s5, 128 }
0x12b1   : > { %p3259_p7 = scmp.ne.s32.totalorder %s3997_s5, %s3258_s8  ;;  %p3264_p10 = scmp.lt.u32.totalorder %s3258_s8, %s3997_s5 }
0x12b3   : > { %p3260_p8 = pnand %p3259_p7, %p3888_p13 }
0x12b5   : > { %p3261_p9 = pneg %p3260_p8 }
0x12b7   : > { %p3266_p11 = pnand %p3264_p10, %p3261_p9 }
0x12b9   : > { %3269 = shalt.err (!%p3266_p11)
}
0x12ba   : > { %3106 = dma.vmem_to_hbm [thread:$0]  (%p3888_p13), %s2762_s28, 128, %s3997_s5, [#allocation8]  }
0x12bb   : > { %3291 = dma.done.wait (%p3888_p13), [#allocation8], 128  }
0x12bc   : > { %3293 = vsyncadd (%p3888_p13), [#allocation8], 4294967168 }
0x12bd PF: > { %s3998_s0 = sld [smem:[#allocation12_spill]]  ;;  %s3999_s27 = sld [smem:[#allocation10_spill]] }
0x12be   : > { %s4000_s3 = sld [smem:[#allocation11_spill]]  ;;  %s4001_s7 = sld [smem:[#allocation13_spill]] }
0x12bf   : > { %s4002_s28 = sld [smem:[#allocation14_spill]] }
0x12c3   : > { %s37_s8 = sadd.s32 1, %s3998_s0  }
0x12c4   : > { %p34_p12 = scmp.ge.s32.totalorder %s37_s8, 8  }
0x12c6   :  { %36 = sbr.rel (!%p34_p12) target bundleno = 17 (0x11), region = 181 }
0x12cd   :  { %2774 = vsyncpa [#allocation8], 1 }
0x12ce   :  { %2776 = vsyncpa [#allocation8 + $0x1], 1 }

</bundles_post_ra>
